<compile_context>
chip_gen: v7x
topology: tpu7x:2x2x1
jax: 0.10.0
libtpu: 0.0.40
codegen_flags: <defaults>
</compile_context>

<pallas_src>
import jax
import jax.numpy as jnp
from jax.experimental import pallas as pl
from jax.experimental.pallas import tpu as pltpu


def _round_up(x, m):
    return (x + m - 1) // m * m


# ----------------------------------------------------------------------------
# In-kernel math helpers
# ----------------------------------------------------------------------------
def _erf_f32(x):
    # Abramowitz & Stegun 7.1.26 (max abs error ~1.5e-7).  Exact divide per the
    # correctness review (no EUP approximate reciprocal).
    a1, a2, a3 = 0.254829592, -0.284496736, 1.421413741
    a4, a5, p = -1.453152027, 1.061405429, 0.3275911
    ax = jnp.abs(x)
    t = 1.0 / (1.0 + p * ax)
    poly = ((((a5 * t + a4) * t + a3) * t + a2) * t + a1) * t
    y = 1.0 - poly * jnp.exp(-ax * ax)
    return jnp.where(x >= 0, y, -y)


def _gelu_exact(x):
    # torch.nn.GELU() default (erf-based, not the tanh approximation)
    return 0.5 * x * (1.0 + _erf_f32(x * 0.7071067811865476))


def _bce_with_logits(logits, labels, pos_weight):
    # BCEWithLogitsLoss(pos_weight): mean(pw*z*softplus(-x) + (1-z)*softplus(x))
    z = labels.astype(jnp.float32)
    return jnp.mean(pos_weight * z * jax.nn.softplus(-logits)
                    + (1.0 - z) * jax.nn.softplus(logits))


# ----------------------------------------------------------------------------
# Kernel
# ----------------------------------------------------------------------------
def _predictor_kernel(
    ids_ref,    # (bt, 2D+128) bf16 : [u_id_emb | v_id_emb | hot_feat padded to 128]
    cnt_ref,    # (bt, Fu+Fv)  bf16 : un-normalized bag-of-feature counts
    cls_ref,    # (bt, Hb)     bf16 : ALBERT [CLS] vector (precomputed input)
    u_tab_ref,  # (Fu, D) bf16 user feature embedding table (VMEM-resident)
    v_tab_ref,  # (Fv, D) bf16 video feature embedding table
    wt_ref,     # (Hb, D) bf16 fc_text weight
    btx_ref,    # (1, D)  f32  fc_text bias
    wh_ref,     # (128, D) bf16 hot_proj weight (rows 4..127 zero)
    bh_ref,     # (1, D)  f32  hot_proj bias
    w1a_ref,    # (2D, 128) bf16 fc_final[0] rows for [u_id | v_id]
    w1b_ref,    # (4D, 128) bf16 fc_final[0] rows for [u_feat | v_feat | text | hot]
    b1_ref,     # (1, 128) f32 fc_final[0] bias
    w2_ref,     # (1, 128) f32 fc_final[3] weight row
    out_ref,    # (bt, 1) f32 logits (final bias folded in the wrapper)
    cat_ref,    # (bt, 4D) bf16 VMEM scratch: [u_feat | v_feat | text | hot]
):
    f32 = jnp.float32
    bf16 = jnp.bfloat16
    Fu = u_tab_ref.shape[0]
    Fv = v_tab_ref.shape[0]
    D = u_tab_ref.shape[1]

    # masked_avg == (counts @ table) / count_sum; counts exclude padding id 0.
    u_cnt = cnt_ref[:, :Fu]
    v_cnt = cnt_ref[:, Fu:Fu + Fv]
    u_den = jnp.maximum(jnp.sum(u_cnt.astype(f32), axis=-1, keepdims=True), 1e-5)
    v_den = jnp.maximum(jnp.sum(v_cnt.astype(f32), axis=-1, keepdims=True), 1e-5)
    u_bag = jnp.dot(u_cnt, u_tab_ref[...], preferred_element_type=f32)
    v_bag = jnp.dot(v_cnt, v_tab_ref[...], preferred_element_type=f32)
    cat_ref[:, 0 * D:1 * D] = (u_bag / u_den).astype(bf16)
    cat_ref[:, 1 * D:2 * D] = (v_bag / v_den).astype(bf16)

    # fc_text: Linear(Hb, D) + ReLU          (Dropout == identity in eval mode)
    text = jnp.dot(cls_ref[...], wt_ref[...], preferred_element_type=f32) + btx_ref[...]
    cat_ref[:, 2 * D:3 * D] = jnp.maximum(text, 0.0).astype(bf16)

    # hot_proj: Linear(4, D) + ReLU -- hot lives zero-padded on the ids-slab
    # tail, so this is one K=128 MXU pass (no narrow (bt, 4) operand / DMA).
    hot = jnp.dot(ids_ref[:, 2 * D:], wh_ref[...], preferred_element_type=f32) + bh_ref[...]
    cat_ref[:, 3 * D:4 * D] = jnp.maximum(hot, 0.0).astype(bf16)

    # fc_final[0] + GELU: two lane-dense MXU passes (ids slab used directly,
    # the other four parts were written straight into cat_ref above).
    h = (jnp.dot(ids_ref[:, :2 * D], w1a_ref[...], preferred_element_type=f32)
         + jnp.dot(cat_ref[...], w1b_ref[...], preferred_element_type=f32)
         + b1_ref[...])
    h = _gelu_exact(h)

    # fc_final[3]: Linear(128, 1) as a VPU multiply + XLU lane reduction.
    out_ref[...] = jnp.sum(h * w2_ref[...], axis=-1, keepdims=True)


# ----------------------------------------------------------------------------
# Parameters
# ----------------------------------------------------------------------------
def make_params(key, num_users, num_videos, num_user_features, num_video_features,
                embedding_dim, bert_hidden):
    """f32 'master' parameters (Linear weights stored as (in, out))."""
    D = embedding_dim
    ks = jax.random.split(key, 12)

    def emb(k, n, d):
        return jax.random.normal(k, (n, d), jnp.float32) * 0.02

    def linear(kw, kb, n_in, n_out):
        lim = float(n_in) ** -0.5
        w = jax.random.uniform(kw, (n_in, n_out), jnp.float32, -lim, lim)
        b = jax.random.uniform(kb, (n_out,), jnp.float32, -lim, lim)
        return w, b

    p = {}
    p["user_id_emb"] = emb(ks[0], num_users, D)
    p["video_id_emb"] = emb(ks[1], num_videos, D)
    p["user_feat_emb"] = emb(ks[2], num_user_features, D).at[0].set(0.0)    # padding_idx=0
    p["video_feat_emb"] = emb(ks[3], num_video_features, D).at[0].set(0.0)  # padding_idx=0
    p["w_text"], p["b_text"] = linear(ks[4], ks[5], bert_hidden, D)
    p["w_hot"], p["b_hot"] = linear(ks[6], ks[7], 4, D)
    p["w1"], p["b1"] = linear(ks[8], ks[9], 6 * D, 128)
    w2, b2 = linear(ks[10], ks[11], 128, 1)
    p["w2"], p["b2"] = w2, b2[0]
    return p


def prepare_kernel_params(p):
    """Pad / reorder / down-cast the master params into kernel operands."""
    bf16 = jnp.bfloat16
    D = p["user_id_emb"].shape[1]
    assert D % 128 == 0, "embedding_dim must be a multiple of 128 (module default is 128)"
    Fu = _round_up(p["user_feat_emb"].shape[0], 128)
    Fv = _round_up(p["video_feat_emb"].shape[0], 128)

    def pad_rows(t, n):
        return jnp.zeros((n, t.shape[1]), t.dtype).at[: t.shape[0]].set(t)

    w1 = p["w1"]
    return {
        # gathered in the wrapper, streamed in bf16
        "user_id_emb": p["user_id_emb"].astype(bf16),
        "video_id_emb": p["video_id_emb"].astype(bf16),
        # VMEM-resident weights (bf16) and biases (f32)
        "u_tab": pad_rows(p["user_feat_emb"], Fu).astype(bf16),
        "v_tab": pad_rows(p["video_feat_emb"], Fv).astype(bf16),
        "w_text": p["w_text"].astype(bf16),
        "b_text": p["b_text"].reshape(1, D),
        "w_hot": pad_rows(p["w_hot"], 128).astype(bf16),
        "b_hot": p["b_hot"].reshape(1, D),
        # fc_final[0] rows re-ordered to match the [ids-slab | scratch-slab] split
        # (torch concat order: [u_id, u_feat, v_id, v_feat, text, hot]).
        "w1_ids": jnp.concatenate([w1[0:D], w1[2 * D:3 * D]], axis=0).astype(bf16),
        "w1_rest": jnp.concatenate(
            [w1[D:2 * D], w1[3 * D:4 * D], w1[4 * D:5 * D], w1[5 * D:6 * D]],
            axis=0).astype(bf16),
        "b1": p["b1"].reshape(1, 128),
        "w2_row": p["w2"].reshape(1, 128),
        "b2": p["b2"],
    }


# ----------------------------------------------------------------------------
# Wrapper-side glue
# ----------------------------------------------------------------------------
def _bag_counts(feat_ids, f_pad):
    """(B, L) int ids (0 == padding) -> (B, f_pad) bf16 UN-normalized counts.

    Scatter-add (no (B, L, F) one-hot intermediate); exact in bf16 for per-row
    multiplicities up to 256."""
    ids = feat_ids.astype(jnp.int32)
    B = ids.shape[0]
    valid = (ids != 0).astype(jnp.float32)
    counts = jnp.zeros((B, f_pad), jnp.float32)
    counts = counts.at[jnp.arange(B)[:, None], ids].add(valid)
    return counts.astype(jnp.bfloat16)


def _pick_tile_and_vmem(B, D, Fu, Fv, Hb):
    """Batch tile + vmem_limit from a VMEM footprint budget (not a hard cap)."""
    try:
        vmem_cap = int(pltpu.get_tpu_info().vmem_capacity_bytes)
    except Exception:
        vmem_cap = 64 * 1024 * 1024                      # conservative (v7x-sized)
    vmem_limit = min(vmem_cap * 3 // 4, 96 * 1024 * 1024)
    budget = int(vmem_limit * 0.7)                       # compiler/pipeline headroom

    # resident bf16 weights (worst case double-buffered) + f32 biases
    resident = 2 * 2 * ((Fu + Fv) * D + Hb * D + 128 * D + 6 * D * 128)
    resident += 2 * 4 * (2 * D + 2 * 128)
    # per batch row: 3 double-buffered bf16 streams + lane-padded f32 out + bf16 scratch
    per_row = 2 * 2 * ((2 * D + 128) + (Fu + Fv) + Hb) + 2 * 4 * 128 + 2 * 4 * D

    bt_cap = (budget - resident) // per_row
    bt_cap = max(16, min(2048, bt_cap) // 16 * 16)
    bt = max(16, min(bt_cap, _round_up(B, 16)))
    return bt, int(vmem_limit)


def binary_video_watch_predictor(kp, user_id, user_feat, video_id, video_feat,
                                 hot_feat, cls_vec, labels=None, pos_weight=1.0):
    bf16 = jnp.bfloat16
    D = kp["u_tab"].shape[1]
    Fu = kp["u_tab"].shape[0]
    Fv = kp["v_tab"].shape[0]
    Hb = kp["w_text"].shape[0]
    B = user_id.shape[0]

    # --- plain-JAX glue: gathers, scatter-add counts, operand coalescing -----
    u_id = jnp.take(kp["user_id_emb"], user_id, axis=0)            # (B, D) bf16
    v_id = jnp.take(kp["video_id_emb"], video_id, axis=0)          # (B, D) bf16
    hot128 = jnp.zeros((B, 128), jnp.float32).at[:, :4].set(
        hot_feat.astype(jnp.float32)).astype(bf16)
    ids_hot = jnp.concatenate([u_id, v_id, hot128], axis=-1)       # (B, 2D+128) bf16
    cnts = jnp.concatenate([_bag_counts(user_feat, Fu),
                            _bag_counts(video_feat, Fv)], axis=-1)  # (B, Fu+Fv) bf16
    cls_bf = cls_vec.astype(bf16)                                   # (B, Hb) bf16

    # --- batch tiling from the VMEM footprint budget --------------------------
    bt, vmem_limit = _pick_tile_and_vmem(B, D, Fu, Fv, Hb)
    b_pad = _round_up(B, bt)
    n_tiles = b_pad // bt

    def padb(x):
        pad = b_pad - x.shape[0]
        return x if pad == 0 else jnp.pad(x, ((0, pad), (0, 0)))

    def run(single_buffer_weights):
        def row_spec(w):                    # batch-tiled, pipelined stream
            return pl.BlockSpec((bt, w), lambda i: (i, 0))

        def res_spec(shape):                # VMEM-resident weight / bias
            if single_buffer_weights:
                return pl.BlockSpec(shape, lambda i: (0,) * len(shape),
                                    pipeline_mode=pl.Buffered(1))
            return pl.BlockSpec(shape, lambda i: (0,) * len(shape))

        return pl.pallas_call(
            _predictor_kernel,
            out_shape=jax.ShapeDtypeStruct((b_pad, 1), jnp.float32),
            grid_spec=pltpu.PrefetchScalarGridSpec(
                num_scalar_prefetch=0,
                grid=(n_tiles,),
                in_specs=[
                    row_spec(2 * D + 128),            # [u_id | v_id | hot]
                    row_spec(Fu + Fv),                # [u_cnt | v_cnt]
                    row_spec(Hb),                     # cls
                    res_spec((Fu, D)), res_spec((Fv, D)),
                    res_spec((Hb, D)), res_spec((1, D)),
                    res_spec((128, D)), res_spec((1, D)),
                    res_spec((2 * D, 128)), res_spec((4 * D, 128)),
                    res_spec((1, 128)), res_spec((1, 128)),
                ],
                out_specs=pl.BlockSpec((bt, 1), lambda i: (i, 0)),
                scratch_shapes=[pltpu.VMEM((bt, 4 * D), bf16)],
            ),
            compiler_params=pltpu.CompilerParams(
                dimension_semantics=("parallel",),
                vmem_limit_bytes=vmem_limit,
            ),
        )(padb(ids_hot), padb(cnts), padb(cls_bf),
          kp["u_tab"], kp["v_tab"],
          kp["w_text"], kp["b_text"],
          kp["w_hot"], kp["b_hot"],
          kp["w1_ids"], kp["w1_rest"], kp["b1"], kp["w2_row"])

    try:
        out = run(True)
        jax.block_until_ready(out)
    except Exception:
        # pl.Buffered(1) single-buffering of resident weights not supported on
        # this jax version -> default double-buffered residents.
        out = run(False)

    logits = out[:B, 0] + kp["b2"]
    if labels is None:
        return {"logits": logits}
    return {"loss": _bce_with_logits(logits, labels, pos_weight), "logits": logits}


# ----------------------------------------------------------------------------
# Pure-JAX f32 reference (mirrors the PyTorch forward, eval mode)
# ----------------------------------------------------------------------------
def reference_forward(p, user_id, user_feat, video_id, video_feat, hot_feat,
                      cls_vec, labels=None, pos_weight=1.0):
    def masked_avg(emb, mask):
        s = jnp.sum(emb * mask, axis=1)
        denom = jnp.maximum(jnp.sum(mask, axis=1), 1e-5)
        return s / denom

    with jax.default_matmul_precision("float32"):
        u_id = p["user_id_emb"][user_id]
        v_id = p["video_id_emb"][video_id]
        u_all = p["user_feat_emb"][user_feat]
        v_all = p["video_feat_emb"][video_feat]
        u_mask = (user_feat != 0)[..., None].astype(jnp.float32)
        v_mask = (video_feat != 0)[..., None].astype(jnp.float32)
        u_feat_emb = masked_avg(u_all, u_mask)
        v_feat_emb = masked_avg(v_all, v_mask)
        text = jax.nn.relu(cls_vec @ p["w_text"] + p["b_text"])
        hot = jax.nn.relu(hot_feat @ p["w_hot"] + p["b_hot"])
        x = jnp.concatenate([u_id, u_feat_emb, v_id, v_feat_emb, text, hot], axis=-1)
        h = jax.nn.gelu(x @ p["w1"] + p["b1"], approximate=False)
        logits = (h @ p["w2"])[:, 0] + p["b2"]
    if labels is None:
        return {"logits": logits}
    return {"loss": _bce_with_logits(logits, labels, pos_weight), "logits": logits}


# ----------------------------------------------------------------------------
if __name__ == "__main__":
    key = jax.random.PRNGKey(0)
    B, D, Lu, Lv, Hb = 8, 128, 6, 5, 256       # D=128 is the module default
    num_users, num_videos = 50, 60
    num_user_features, num_video_features = 20, 24

    kparam_key, k1, k2, k3, k4, k5, k6, k7 = jax.random.split(key, 8)
    params = make_params(kparam_key, num_users, num_videos, num_user_features,
                         num_video_features, D, Hb)
    kparams = prepare_kernel_params(params)

    user_id = jax.random.randint(k1, (B,), 0, num_users)
    video_id = jax.random.randint(k2, (B,), 0, num_videos)
    user_feat = jax.random.randint(k3, (B, Lu), 0, num_user_features)     # 0 == padding
    video_feat = jax.random.randint(k4, (B, Lv), 0, num_video_features)   # 0 == padding
    hot_feat = jax.random.normal(k5, (B, 4), jnp.float32)
    # TODO(synk): the frozen ALBERT/BertTokenizer text encoder has no Pallas
    # equivalent; its mean-of-last-4-hidden-layers [CLS] vector is supplied as
    # a precomputed input (fc_text's Linear+ReLU IS computed inside the kernel).
    cls_vec = jax.random.normal(k6, (B, Hb), jnp.float32)
    labels = jax.random.bernoulli(k7, 0.5, (B,)).astype(jnp.float32)

    out = binary_video_watch_predictor(kparams, user_id, user_feat, video_id,
                                       video_feat, hot_feat, cls_vec,
                                       labels=labels, pos_weight=2.0)
    ref = reference_forward(params, user_id, user_feat, video_id, video_feat,
                            hot_feat, cls_vec, labels=labels, pos_weight=2.0)

    jax.block_until_ready(out["logits"])
    jax.block_until_ready(out["loss"])
    assert jnp.max(jnp.abs(out["logits"] - ref["logits"])) < 5e-2, "logits mismatch"
    assert jnp.abs(out["loss"] - ref["loss"]) < 5e-2, "loss mismatch"
    print("KERNEL_OK")
</pallas_src>

<mosaic_0001>
module attributes {stable_mosaic.version = 11 : i64} {
  func.func @_predictor_kernel(%arg0: i32, %arg1: memref<16x384xbf16, #tpu.memory_space<vmem>>, %arg2: memref<16x256xbf16, #tpu.memory_space<vmem>>, %arg3: memref<16x256xbf16, #tpu.memory_space<vmem>>, %arg4: memref<128x128xbf16, #tpu.memory_space<vmem>>, %arg5: memref<128x128xbf16, #tpu.memory_space<vmem>>, %arg6: memref<256x128xbf16, #tpu.memory_space<vmem>>, %arg7: memref<1x128xf32, #tpu.memory_space<vmem>>, %arg8: memref<128x128xbf16, #tpu.memory_space<vmem>>, %arg9: memref<1x128xf32, #tpu.memory_space<vmem>>, %arg10: memref<256x128xbf16, #tpu.memory_space<vmem>>, %arg11: memref<512x128xbf16, #tpu.memory_space<vmem>>, %arg12: memref<1x128xf32, #tpu.memory_space<vmem>>, %arg13: memref<1x128xf32, #tpu.memory_space<vmem>>, %arg14: memref<16x1xf32, #tpu.memory_space<vmem>>, %arg15: memref<16x512xbf16, #tpu.memory_space<vmem>>) attributes {dimension_semantics = [#tpu.dimension_semantics<parallel>], iteration_bounds = array<i64: 1>, scalar_prefetch = 0 : i64, scratch_operands = 1 : i64, tpu.core_type = #tpu.core_type<tc>, window_params = [{transform_indices = @transform_0, window_bounds = array<i64: 16, 384>}, {transform_indices = @transform_1, window_bounds = array<i64: 16, 256>}, {transform_indices = @transform_2, window_bounds = array<i64: 16, 256>}, {pipeline_mode = #tpu.pipeline_mode<synchronous>, transform_indices = @transform_3, window_bounds = array<i64: 128, 128>}, {pipeline_mode = #tpu.pipeline_mode<synchronous>, transform_indices = @transform_4, window_bounds = array<i64: 128, 128>}, {pipeline_mode = #tpu.pipeline_mode<synchronous>, transform_indices = @transform_5, window_bounds = array<i64: 256, 128>}, {pipeline_mode = #tpu.pipeline_mode<synchronous>, transform_indices = @transform_6, window_bounds = array<i64: 1, 128>}, {pipeline_mode = #tpu.pipeline_mode<synchronous>, transform_indices = @transform_7, window_bounds = array<i64: 128, 128>}, {pipeline_mode = #tpu.pipeline_mode<synchronous>, transform_indices = @transform_8, window_bounds = array<i64: 1, 128>}, {pipeline_mode = #tpu.pipeline_mode<synchronous>, transform_indices = @transform_9, window_bounds = array<i64: 256, 128>}, {pipeline_mode = #tpu.pipeline_mode<synchronous>, transform_indices = @transform_10, window_bounds = array<i64: 512, 128>}, {pipeline_mode = #tpu.pipeline_mode<synchronous>, transform_indices = @transform_11, window_bounds = array<i64: 1, 128>}, {pipeline_mode = #tpu.pipeline_mode<synchronous>, transform_indices = @transform_12, window_bounds = array<i64: 1, 128>}, {transform_indices = @transform_13, window_bounds = array<i64: 16, 1>}]} {
    %c0 = arith.constant 0 : index
    %c0_0 = arith.constant 0 : index
    %0 = vector.load %arg2[%c0, %c0_0] : memref<16x256xbf16, #tpu.memory_space<vmem>>, vector<16x128xbf16>
    %c0_1 = arith.constant 0 : index
    %c128 = arith.constant 128 : index
    %1 = vector.load %arg2[%c0_1, %c128] : memref<16x256xbf16, #tpu.memory_space<vmem>>, vector<16x128xbf16>
    %2 = arith.extf %0 : vector<16x128xbf16> to vector<16x128xf32>
    %cst = arith.constant dense<0.000000e+00> : vector<16xf32>
    %3 = vector.multi_reduction <add>, %2, %cst [1] : vector<16x128xf32> to vector<16xf32>
    %4 = vector.shape_cast %3 : vector<16xf32> to vector<16x1xf32>
    %cst_2 = arith.constant 9.99999974E-6 : f32
    %5 = vector.broadcast %cst_2 : f32 to vector<16x1xf32>
    %6 = arith.maximumf %4, %5 : vector<16x1xf32>
    %7 = arith.extf %1 : vector<16x128xbf16> to vector<16x128xf32>
    %cst_3 = arith.constant dense<0.000000e+00> : vector<16xf32>
    %8 = vector.multi_reduction <add>, %7, %cst_3 [1] : vector<16x128xf32> to vector<16xf32>
    %9 = vector.shape_cast %8 : vector<16xf32> to vector<16x1xf32>
    %cst_4 = arith.constant 9.99999974E-6 : f32
    %10 = vector.broadcast %cst_4 : f32 to vector<16x1xf32>
    %11 = arith.maximumf %9, %10 : vector<16x1xf32>
    %c0_5 = arith.constant 0 : index
    %c0_6 = arith.constant 0 : index
    %12 = vector.load %arg4[%c0_5, %c0_6] : memref<128x128xbf16, #tpu.memory_space<vmem>>, vector<128x128xbf16>
    %cst_7 = arith.constant dense<0.000000e+00> : vector<16x128xf32>
    %13 = tpu.matmul %0, %12, %cst_7 {dimension_numbers = #tpu.dot_dimension_numbers<[1], [0], [0], [1], [0, 0, 1, 1], [], []>} : vector<16x128xbf16>, vector<128x128xbf16>, vector<16x128xf32> -> vector<16x128xf32>
    %c0_8 = arith.constant 0 : index
    %c0_9 = arith.constant 0 : index
    %14 = vector.load %arg5[%c0_8, %c0_9] : memref<128x128xbf16, #tpu.memory_space<vmem>>, vector<128x128xbf16>
    %cst_10 = arith.constant dense<0.000000e+00> : vector<16x128xf32>
    %15 = tpu.matmul %1, %14, %cst_10 {dimension_numbers = #tpu.dot_dimension_numbers<[1], [0], [0], [1], [0, 0, 1, 1], [], []>} : vector<16x128xbf16>, vector<128x128xbf16>, vector<16x128xf32> -> vector<16x128xf32>
    %16 = vector.broadcast %6 : vector<16x1xf32> to vector<16x128xf32>
    %17 = arith.divf %13, %16 : vector<16x128xf32>
    %18 = arith.truncf %17 : vector<16x128xf32> to vector<16x128xbf16>
    %c0_11 = arith.constant 0 : index
    %c0_12 = arith.constant 0 : index
    %19 = vector.load %arg15[%c0_11, %c0_12] : memref<16x512xbf16, #tpu.memory_space<vmem>>, vector<16x128xbf16>
    tpu.vector_store %arg15[%c0_11, %c0_12], %18 {strides = array<i32>} : memref<16x512xbf16, #tpu.memory_space<vmem>>, vector<16x128xbf16>,
    %20 = vector.broadcast %11 : vector<16x1xf32> to vector<16x128xf32>
    %21 = arith.divf %15, %20 : vector<16x128xf32>
    %22 = arith.truncf %21 : vector<16x128xf32> to vector<16x128xbf16>
    %c0_13 = arith.constant 0 : index
    %c128_14 = arith.constant 128 : index
    %23 = vector.load %arg15[%c0_13, %c128_14] : memref<16x512xbf16, #tpu.memory_space<vmem>>, vector<16x128xbf16>
    tpu.vector_store %arg15[%c0_13, %c128_14], %22 {strides = array<i32>} : memref<16x512xbf16, #tpu.memory_space<vmem>>, vector<16x128xbf16>,
    %c0_15 = arith.constant 0 : index
    %c0_16 = arith.constant 0 : index
    %24 = vector.load %arg3[%c0_15, %c0_16] : memref<16x256xbf16, #tpu.memory_space<vmem>>, vector<16x256xbf16>
    %c0_17 = arith.constant 0 : index
    %c0_18 = arith.constant 0 : index
    %25 = vector.load %arg6[%c0_17, %c0_18] : memref<256x128xbf16, #tpu.memory_space<vmem>>, vector<256x128xbf16>
    %cst_19 = arith.constant dense<0.000000e+00> : vector<16x128xf32>
    %26 = tpu.matmul %24, %25, %cst_19 {dimension_numbers = #tpu.dot_dimension_numbers<[1], [0], [0], [1], [0, 0, 1, 1], [], []>} : vector<16x256xbf16>, vector<256x128xbf16>, vector<16x128xf32> -> vector<16x128xf32>
    %c0_20 = arith.constant 0 : index
    %c0_21 = arith.constant 0 : index
    %27 = vector.load %arg7[%c0_20, %c0_21] : memref<1x128xf32, #tpu.memory_space<vmem>>, vector<1x128xf32>
    %28 = vector.broadcast %27 : vector<1x128xf32> to vector<16x128xf32>
    %29 = arith.addf %26, %28 : vector<16x128xf32>
    %cst_22 = arith.constant 0.000000e+00 : f32
    %30 = vector.broadcast %cst_22 : f32 to vector<16x128xf32>
    %31 = arith.maximumf %29, %30 : vector<16x128xf32>
    %32 = arith.truncf %31 : vector<16x128xf32> to vector<16x128xbf16>
    %c0_23 = arith.constant 0 : index
    %c256 = arith.constant 256 : index
    %33 = vector.load %arg15[%c0_23, %c256] : memref<16x512xbf16, #tpu.memory_space<vmem>>, vector<16x128xbf16>
    tpu.vector_store %arg15[%c0_23, %c256], %32 {strides = array<i32>} : memref<16x512xbf16, #tpu.memory_space<vmem>>, vector<16x128xbf16>,
    %c0_24 = arith.constant 0 : index
    %c256_25 = arith.constant 256 : index
    %34 = vector.load %arg1[%c0_24, %c256_25] : memref<16x384xbf16, #tpu.memory_space<vmem>>, vector<16x128xbf16>
    %c0_26 = arith.constant 0 : index
    %c0_27 = arith.constant 0 : index
    %35 = vector.load %arg8[%c0_26, %c0_27] : memref<128x128xbf16, #tpu.memory_space<vmem>>, vector<128x128xbf16>
    %cst_28 = arith.constant dense<0.000000e+00> : vector<16x128xf32>
    %36 = tpu.matmul %34, %35, %cst_28 {dimension_numbers = #tpu.dot_dimension_numbers<[1], [0], [0], [1], [0, 0, 1, 1], [], []>} : vector<16x128xbf16>, vector<128x128xbf16>, vector<16x128xf32> -> vector<16x128xf32>
    %c0_29 = arith.constant 0 : index
    %c0_30 = arith.constant 0 : index
    %37 = vector.load %arg9[%c0_29, %c0_30] : memref<1x128xf32, #tpu.memory_space<vmem>>, vector<1x128xf32>
    %38 = vector.broadcast %37 : vector<1x128xf32> to vector<16x128xf32>
    %39 = arith.addf %36, %38 : vector<16x128xf32>
    %cst_31 = arith.constant 0.000000e+00 : f32
    %40 = vector.broadcast %cst_31 : f32 to vector<16x128xf32>
    %41 = arith.maximumf %39, %40 : vector<16x128xf32>
    %42 = arith.truncf %41 : vector<16x128xf32> to vector<16x128xbf16>
    %c0_32 = arith.constant 0 : index
    %c384 = arith.constant 384 : index
    %43 = vector.load %arg15[%c0_32, %c384] : memref<16x512xbf16, #tpu.memory_space<vmem>>, vector<16x128xbf16>
    tpu.vector_store %arg15[%c0_32, %c384], %42 {strides = array<i32>} : memref<16x512xbf16, #tpu.memory_space<vmem>>, vector<16x128xbf16>,
    %c0_33 = arith.constant 0 : index
    %c0_34 = arith.constant 0 : index
    %44 = vector.load %arg1[%c0_33, %c0_34] : memref<16x384xbf16, #tpu.memory_space<vmem>>, vector<16x256xbf16>
    %c0_35 = arith.constant 0 : index
    %c0_36 = arith.constant 0 : index
    %45 = vector.load %arg10[%c0_35, %c0_36] : memref<256x128xbf16, #tpu.memory_space<vmem>>, vector<256x128xbf16>
    %cst_37 = arith.constant dense<0.000000e+00> : vector<16x128xf32>
    %46 = tpu.matmul %44, %45, %cst_37 {dimension_numbers = #tpu.dot_dimension_numbers<[1], [0], [0], [1], [0, 0, 1, 1], [], []>} : vector<16x256xbf16>, vector<256x128xbf16>, vector<16x128xf32> -> vector<16x128xf32>
    %c0_38 = arith.constant 0 : index
    %c0_39 = arith.constant 0 : index
    %47 = vector.load %arg15[%c0_38, %c0_39] : memref<16x512xbf16, #tpu.memory_space<vmem>>, vector<16x512xbf16>
    %c0_40 = arith.constant 0 : index
    %c0_41 = arith.constant 0 : index
    %48 = vector.load %arg11[%c0_40, %c0_41] : memref<512x128xbf16, #tpu.memory_space<vmem>>, vector<512x128xbf16>
    %cst_42 = arith.constant dense<0.000000e+00> : vector<16x128xf32>
    %49 = tpu.matmul %47, %48, %cst_42 {dimension_numbers = #tpu.dot_dimension_numbers<[1], [0], [0], [1], [0, 0, 1, 1], [], []>} : vector<16x512xbf16>, vector<512x128xbf16>, vector<16x128xf32> -> vector<16x128xf32>
    %50 = arith.addf %46, %49 : vector<16x128xf32>
    %c0_43 = arith.constant 0 : index
    %c0_44 = arith.constant 0 : index
    %51 = vector.load %arg12[%c0_43, %c0_44] : memref<1x128xf32, #tpu.memory_space<vmem>>, vector<1x128xf32>
    %52 = vector.broadcast %51 : vector<1x128xf32> to vector<16x128xf32>
    %53 = arith.addf %50, %52 : vector<16x128xf32>
    %cst_45 = arith.constant 5.000000e-01 : f32
    %54 = vector.broadcast %cst_45 : f32 to vector<16x128xf32>
    %55 = arith.mulf %54, %53 : vector<16x128xf32>
    %cst_46 = arith.constant 0.707106769 : f32
    %56 = vector.broadcast %cst_46 : f32 to vector<16x128xf32>
    %57 = arith.mulf %53, %56 : vector<16x128xf32>
    %58 = math.absf %57 : vector<16x128xf32>
    %cst_47 = arith.constant 0.327591091 : f32
    %59 = vector.broadcast %cst_47 : f32 to vector<16x128xf32>
    %60 = arith.mulf %59, %58 : vector<16x128xf32>
    %cst_48 = arith.constant 1.000000e+00 : f32
    %61 = vector.broadcast %cst_48 : f32 to vector<16x128xf32>
    %62 = arith.addf %61, %60 : vector<16x128xf32>
    %cst_49 = arith.constant 1.000000e+00 : f32
    %63 = vector.broadcast %cst_49 : f32 to vector<16x128xf32>
    %64 = arith.divf %63, %62 : vector<16x128xf32>
    %cst_50 = arith.constant 1.06140542 : f32
    %65 = vector.broadcast %cst_50 : f32 to vector<16x128xf32>
    %66 = arith.mulf %65, %64 : vector<16x128xf32>
    %cst_51 = arith.constant -1.45315206 : f32
    %67 = vector.broadcast %cst_51 : f32 to vector<16x128xf32>
    %68 = arith.addf %66, %67 : vector<16x128xf32>
    %69 = arith.mulf %68, %64 : vector<16x128xf32>
    %cst_52 = arith.constant 1.42141378 : f32
    %70 = vector.broadcast %cst_52 : f32 to vector<16x128xf32>
    %71 = arith.addf %69, %70 : vector<16x128xf32>
    %72 = arith.mulf %71, %64 : vector<16x128xf32>
    %cst_53 = arith.constant -0.284496725 : f32
    %73 = vector.broadcast %cst_53 : f32 to vector<16x128xf32>
    %74 = arith.addf %72, %73 : vector<16x128xf32>
    %75 = arith.mulf %74, %64 : vector<16x128xf32>
    %cst_54 = arith.constant 0.254829586 : f32
    %76 = vector.broadcast %cst_54 : f32 to vector<16x128xf32>
    %77 = arith.addf %75, %76 : vector<16x128xf32>
    %78 = arith.mulf %77, %64 : vector<16x128xf32>
    %cst_55 = arith.constant 0.000000e+00 : f32
    %79 = vector.broadcast %cst_55 : f32 to vector<16x128xf32>
    %80 = arith.subf %79, %58 : vector<16x128xf32>
    %81 = arith.mulf %80, %58 : vector<16x128xf32>
    %82 = math.exp %81 : vector<16x128xf32>
    %83 = arith.mulf %78, %82 : vector<16x128xf32>
    %cst_56 = arith.constant 1.000000e+00 : f32
    %84 = vector.broadcast %cst_56 : f32 to vector<16x128xf32>
    %85 = arith.subf %84, %83 : vector<16x128xf32>
    %cst_57 = arith.constant 0.000000e+00 : f32
    %86 = vector.broadcast %cst_57 : f32 to vector<16x128xf32>
    %87 = arith.cmpf oge, %57, %86 : vector<16x128xf32>
    %cst_58 = arith.constant 0.000000e+00 : f32
    %88 = vector.broadcast %cst_58 : f32 to vector<16x128xf32>
    %89 = arith.subf %88, %85 : vector<16x128xf32>
    %90 = arith.select %87, %85, %89 : vector<16x128xi1>, vector<16x128xf32>
    %cst_59 = arith.constant 1.000000e+00 : f32
    %91 = vector.broadcast %cst_59 : f32 to vector<16x128xf32>
    %92 = arith.addf %91, %90 : vector<16x128xf32>
    %93 = arith.mulf %55, %92 : vector<16x128xf32>
    %c0_60 = arith.constant 0 : index
    %c0_61 = arith.constant 0 : index
    %94 = vector.load %arg13[%c0_60, %c0_61] : memref<1x128xf32, #tpu.memory_space<vmem>>, vector<1x128xf32>
    %95 = vector.broadcast %94 : vector<1x128xf32> to vector<16x128xf32>
    %96 = arith.mulf %93, %95 : vector<16x128xf32>
    %cst_62 = arith.constant dense<0.000000e+00> : vector<16xf32>
    %97 = vector.multi_reduction <add>, %96, %cst_62 [1] : vector<16x128xf32> to vector<16xf32>
    %98 = vector.shape_cast %97 : vector<16xf32> to vector<16x1xf32>
    %c0_63 = arith.constant 0 : index
    %c0_64 = arith.constant 0 : index
    %99 = vector.load %arg14[%c0_63, %c0_64] : memref<16x1xf32, #tpu.memory_space<vmem>>, vector<16x1xf32>
    tpu.vector_store %arg14[%c0_63, %c0_64], %98 {strides = array<i32>} : memref<16x1xf32, #tpu.memory_space<vmem>>, vector<16x1xf32>,
    return
  }
  func.func @transform_0(%arg0: i32) -> (i32, i32) {
    %c0_i32 = arith.constant 0 : i32
    %c0_i32_0 = arith.constant 0 : i32
    return %arg0, %c0_i32 : i32, i32
  }
  func.func @transform_1(%arg0: i32) -> (i32, i32) {
    %c0_i32 = arith.constant 0 : i32
    %c0_i32_0 = arith.constant 0 : i32
    return %arg0, %c0_i32 : i32, i32
  }
  func.func @transform_2(%arg0: i32) -> (i32, i32) {
    %c0_i32 = arith.constant 0 : i32
    %c0_i32_0 = arith.constant 0 : i32
    return %arg0, %c0_i32 : i32, i32
  }
  func.func @transform_3(%arg0: i32) -> (i32, i32) {
    %c0_i32 = arith.constant 0 : i32
    %c0_i32_0 = arith.constant 0 : i32
    %c0_i32_1 = arith.constant 0 : i32
    return %c0_i32, %c0_i32_0 : i32, i32
  }
  func.func @transform_4(%arg0: i32) -> (i32, i32) {
    %c0_i32 = arith.constant 0 : i32
    %c0_i32_0 = arith.constant 0 : i32
    %c0_i32_1 = arith.constant 0 : i32
    return %c0_i32, %c0_i32_0 : i32, i32
  }
  func.func @transform_5(%arg0: i32) -> (i32, i32) {
    %c0_i32 = arith.constant 0 : i32
    %c0_i32_0 = arith.constant 0 : i32
    %c0_i32_1 = arith.constant 0 : i32
    return %c0_i32, %c0_i32_0 : i32, i32
  }
  func.func @transform_6(%arg0: i32) -> (i32, i32) {
    %c0_i32 = arith.constant 0 : i32
    %c0_i32_0 = arith.constant 0 : i32
    %c0_i32_1 = arith.constant 0 : i32
    return %c0_i32, %c0_i32_0 : i32, i32
  }
  func.func @transform_7(%arg0: i32) -> (i32, i32) {
    %c0_i32 = arith.constant 0 : i32
    %c0_i32_0 = arith.constant 0 : i32
    %c0_i32_1 = arith.constant 0 : i32
    return %c0_i32, %c0_i32_0 : i32, i32
  }
  func.func @transform_8(%arg0: i32) -> (i32, i32) {
    %c0_i32 = arith.constant 0 : i32
    %c0_i32_0 = arith.constant 0 : i32
    %c0_i32_1 = arith.constant 0 : i32
    return %c0_i32, %c0_i32_0 : i32, i32
  }
  func.func @transform_9(%arg0: i32) -> (i32, i32) {
    %c0_i32 = arith.constant 0 : i32
    %c0_i32_0 = arith.constant 0 : i32
    %c0_i32_1 = arith.constant 0 : i32
    return %c0_i32, %c0_i32_0 : i32, i32
  }
  func.func @transform_10(%arg0: i32) -> (i32, i32) {
    %c0_i32 = arith.constant 0 : i32
    %c0_i32_0 = arith.constant 0 : i32
    %c0_i32_1 = arith.constant 0 : i32
    return %c0_i32, %c0_i32_0 : i32, i32
  }
  func.func @transform_11(%arg0: i32) -> (i32, i32) {
    %c0_i32 = arith.constant 0 : i32
    %c0_i32_0 = arith.constant 0 : i32
    %c0_i32_1 = arith.constant 0 : i32
    return %c0_i32, %c0_i32_0 : i32, i32
  }
  func.func @transform_12(%arg0: i32) -> (i32, i32) {
    %c0_i32 = arith.constant 0 : i32
    %c0_i32_0 = arith.constant 0 : i32
    %c0_i32_1 = arith.constant 0 : i32
    return %c0_i32, %c0_i32_0 : i32, i32
  }
  func.func @transform_13(%arg0: i32) -> (i32, i32) {
    %c0_i32 = arith.constant 0 : i32
    %c0_i32_0 = arith.constant 0 : i32
    return %arg0, %c0_i32 : i32, i32
  }
}

module attributes {stable_mosaic.version = 11 : i64} {
  func.func @_predictor_kernel(%arg0: i32, %arg1: memref<16x384xbf16, #tpu.memory_space<vmem>>, %arg2: memref<16x256xbf16, #tpu.memory_space<vmem>>, %arg3: memref<16x256xbf16, #tpu.memory_space<vmem>>, %arg4: memref<128x128xbf16, #tpu.memory_space<vmem>>, %arg5: memref<128x128xbf16, #tpu.memory_space<vmem>>, %arg6: memref<256x128xbf16, #tpu.memory_space<vmem>>, %arg7: memref<1x128xf32, #tpu.memory_space<vmem>>, %arg8: memref<128x128xbf16, #tpu.memory_space<vmem>>, %arg9: memref<1x128xf32, #tpu.memory_space<vmem>>, %arg10: memref<256x128xbf16, #tpu.memory_space<vmem>>, %arg11: memref<512x128xbf16, #tpu.memory_space<vmem>>, %arg12: memref<1x128xf32, #tpu.memory_space<vmem>>, %arg13: memref<1x128xf32, #tpu.memory_space<vmem>>, %arg14: memref<16x1xf32, #tpu.memory_space<vmem>>, %arg15: memref<16x512xbf16, #tpu.memory_space<vmem>>) attributes {dimension_semantics = [#tpu.dimension_semantics<parallel>], iteration_bounds = array<i64: 1>, scalar_prefetch = 0 : i64, scratch_operands = 1 : i64, tpu.core_type = #tpu.core_type<tc>, window_params = [{transform_indices = @transform_0, window_bounds = array<i64: 16, 384>}, {transform_indices = @transform_1, window_bounds = array<i64: 16, 256>}, {transform_indices = @transform_2, window_bounds = array<i64: 16, 256>}, {pipeline_mode = #tpu.pipeline_mode<synchronous>, transform_indices = @transform_3, window_bounds = array<i64: 128, 128>}, {pipeline_mode = #tpu.pipeline_mode<synchronous>, transform_indices = @transform_4, window_bounds = array<i64: 128, 128>}, {pipeline_mode = #tpu.pipeline_mode<synchronous>, transform_indices = @transform_5, window_bounds = array<i64: 256, 128>}, {pipeline_mode = #tpu.pipeline_mode<synchronous>, transform_indices = @transform_6, window_bounds = array<i64: 1, 128>}, {pipeline_mode = #tpu.pipeline_mode<synchronous>, transform_indices = @transform_7, window_bounds = array<i64: 128, 128>}, {pipeline_mode = #tpu.pipeline_mode<synchronous>, transform_indices = @transform_8, window_bounds = array<i64: 1, 128>}, {pipeline_mode = #tpu.pipeline_mode<synchronous>, transform_indices = @transform_9, window_bounds = array<i64: 256, 128>}, {pipeline_mode = #tpu.pipeline_mode<synchronous>, transform_indices = @transform_10, window_bounds = array<i64: 512, 128>}, {pipeline_mode = #tpu.pipeline_mode<synchronous>, transform_indices = @transform_11, window_bounds = array<i64: 1, 128>}, {pipeline_mode = #tpu.pipeline_mode<synchronous>, transform_indices = @transform_12, window_bounds = array<i64: 1, 128>}, {transform_indices = @transform_13, window_bounds = array<i64: 16, 1>}]} {
    %c0 = arith.constant 0 : index
    %c0_0 = arith.constant 0 : index
    %0 = vector.load %arg2[%c0, %c0_0] : memref<16x256xbf16, #tpu.memory_space<vmem>>, vector<16x128xbf16>
    %c0_1 = arith.constant 0 : index
    %c128 = arith.constant 128 : index
    %1 = vector.load %arg2[%c0_1, %c128] : memref<16x256xbf16, #tpu.memory_space<vmem>>, vector<16x128xbf16>
    %2 = arith.extf %0 : vector<16x128xbf16> to vector<16x128xf32>
    %cst = arith.constant dense<0.000000e+00> : vector<16xf32>
    %3 = vector.multi_reduction <add>, %2, %cst [1] : vector<16x128xf32> to vector<16xf32>
    %4 = vector.shape_cast %3 : vector<16xf32> to vector<16x1xf32>
    %cst_2 = arith.constant 9.99999974E-6 : f32
    %5 = vector.broadcast %cst_2 : f32 to vector<16x1xf32>
    %6 = arith.maximumf %4, %5 : vector<16x1xf32>
    %7 = arith.extf %1 : vector<16x128xbf16> to vector<16x128xf32>
    %cst_3 = arith.constant dense<0.000000e+00> : vector<16xf32>
    %8 = vector.multi_reduction <add>, %7, %cst_3 [1] : vector<16x128xf32> to vector<16xf32>
    %9 = vector.shape_cast %8 : vector<16xf32> to vector<16x1xf32>
    %cst_4 = arith.constant 9.99999974E-6 : f32
    %10 = vector.broadcast %cst_4 : f32 to vector<16x1xf32>
    %11 = arith.maximumf %9, %10 : vector<16x1xf32>
    %c0_5 = arith.constant 0 : index
    %c0_6 = arith.constant 0 : index
    %12 = vector.load %arg4[%c0_5, %c0_6] : memref<128x128xbf16, #tpu.memory_space<vmem>>, vector<128x128xbf16>
    %cst_7 = arith.constant dense<0.000000e+00> : vector<16x128xf32>
    %13 = tpu.matmul %0, %12, %cst_7 {dimension_numbers = #tpu.dot_dimension_numbers<[1], [0], [0], [1], [0, 0, 1, 1], [], []>} : vector<16x128xbf16>, vector<128x128xbf16>, vector<16x128xf32> -> vector<16x128xf32>
    %c0_8 = arith.constant 0 : index
    %c0_9 = arith.constant 0 : index
    %14 = vector.load %arg5[%c0_8, %c0_9] : memref<128x128xbf16, #tpu.memory_space<vmem>>, vector<128x128xbf16>
    %cst_10 = arith.constant dense<0.000000e+00> : vector<16x128xf32>
    %15 = tpu.matmul %1, %14, %cst_10 {dimension_numbers = #tpu.dot_dimension_numbers<[1], [0], [0], [1], [0, 0, 1, 1], [], []>} : vector<16x128xbf16>, vector<128x128xbf16>, vector<16x128xf32> -> vector<16x128xf32>
    %16 = vector.broadcast %6 : vector<16x1xf32> to vector<16x128xf32>
    %17 = arith.divf %13, %16 : vector<16x128xf32>
    %18 = arith.truncf %17 : vector<16x128xf32> to vector<16x128xbf16>
    %c0_11 = arith.constant 0 : index
    %c0_12 = arith.constant 0 : index
    %19 = vector.load %arg15[%c0_11, %c0_12] : memref<16x512xbf16, #tpu.memory_space<vmem>>, vector<16x128xbf16>
    tpu.vector_store %arg15[%c0_11, %c0_12], %18 {strides = array<i32>} : memref<16x512xbf16, #tpu.memory_space<vmem>>, vector<16x128xbf16>,
    %20 = vector.broadcast %11 : vector<16x1xf32> to vector<16x128xf32>
    %21 = arith.divf %15, %20 : vector<16x128xf32>
    %22 = arith.truncf %21 : vector<16x128xf32> to vector<16x128xbf16>
    %c0_13 = arith.constant 0 : index
    %c128_14 = arith.constant 128 : index
    %23 = vector.load %arg15[%c0_13, %c128_14] : memref<16x512xbf16, #tpu.memory_space<vmem>>, vector<16x128xbf16>
    tpu.vector_store %arg15[%c0_13, %c128_14], %22 {strides = array<i32>} : memref<16x512xbf16, #tpu.memory_space<vmem>>, vector<16x128xbf16>,
    %c0_15 = arith.constant 0 : index
    %c0_16 = arith.constant 0 : index
    %24 = vector.load %arg3[%c0_15, %c0_16] : memref<16x256xbf16, #tpu.memory_space<vmem>>, vector<16x256xbf16>
    %c0_17 = arith.constant 0 : index
    %c0_18 = arith.constant 0 : index
    %25 = vector.load %arg6[%c0_17, %c0_18] : memref<256x128xbf16, #tpu.memory_space<vmem>>, vector<256x128xbf16>
    %cst_19 = arith.constant dense<0.000000e+00> : vector<16x128xf32>
    %26 = tpu.matmul %24, %25, %cst_19 {dimension_numbers = #tpu.dot_dimension_numbers<[1], [0], [0], [1], [0, 0, 1, 1], [], []>} : vector<16x256xbf16>, vector<256x128xbf16>, vector<16x128xf32> -> vector<16x128xf32>
    %c0_20 = arith.constant 0 : index
    %c0_21 = arith.constant 0 : index
    %27 = vector.load %arg7[%c0_20, %c0_21] : memref<1x128xf32, #tpu.memory_space<vmem>>, vector<1x128xf32>
    %28 = vector.broadcast %27 : vector<1x128xf32> to vector<16x128xf32>
    %29 = arith.addf %26, %28 : vector<16x128xf32>
    %cst_22 = arith.constant 0.000000e+00 : f32
    %30 = vector.broadcast %cst_22 : f32 to vector<16x128xf32>
    %31 = arith.maximumf %29, %30 : vector<16x128xf32>
    %32 = arith.truncf %31 : vector<16x128xf32> to vector<16x128xbf16>
    %c0_23 = arith.constant 0 : index
    %c256 = arith.constant 256 : index
    %33 = vector.load %arg15[%c0_23, %c256] : memref<16x512xbf16, #tpu.memory_space<vmem>>, vector<16x128xbf16>
    tpu.vector_store %arg15[%c0_23, %c256], %32 {strides = array<i32>} : memref<16x512xbf16, #tpu.memory_space<vmem>>, vector<16x128xbf16>,
    %c0_24 = arith.constant 0 : index
    %c256_25 = arith.constant 256 : index
    %34 = vector.load %arg1[%c0_24, %c256_25] : memref<16x384xbf16, #tpu.memory_space<vmem>>, vector<16x128xbf16>
    %c0_26 = arith.constant 0 : index
    %c0_27 = arith.constant 0 : index
    %35 = vector.load %arg8[%c0_26, %c0_27] : memref<128x128xbf16, #tpu.memory_space<vmem>>, vector<128x128xbf16>
    %cst_28 = arith.constant dense<0.000000e+00> : vector<16x128xf32>
    %36 = tpu.matmul %34, %35, %cst_28 {dimension_numbers = #tpu.dot_dimension_numbers<[1], [0], [0], [1], [0, 0, 1, 1], [], []>} : vector<16x128xbf16>, vector<128x128xbf16>, vector<16x128xf32> -> vector<16x128xf32>
    %c0_29 = arith.constant 0 : index
    %c0_30 = arith.constant 0 : index
    %37 = vector.load %arg9[%c0_29, %c0_30] : memref<1x128xf32, #tpu.memory_space<vmem>>, vector<1x128xf32>
    %38 = vector.broadcast %37 : vector<1x128xf32> to vector<16x128xf32>
    %39 = arith.addf %36, %38 : vector<16x128xf32>
    %cst_31 = arith.constant 0.000000e+00 : f32
    %40 = vector.broadcast %cst_31 : f32 to vector<16x128xf32>
    %41 = arith.maximumf %39, %40 : vector<16x128xf32>
    %42 = arith.truncf %41 : vector<16x128xf32> to vector<16x128xbf16>
    %c0_32 = arith.constant 0 : index
    %c384 = arith.constant 384 : index
    %43 = vector.load %arg15[%c0_32, %c384] : memref<16x512xbf16, #tpu.memory_space<vmem>>, vector<16x128xbf16>
    tpu.vector_store %arg15[%c0_32, %c384], %42 {strides = array<i32>} : memref<16x512xbf16, #tpu.memory_space<vmem>>, vector<16x128xbf16>,
    %c0_33 = arith.constant 0 : index
    %c0_34 = arith.constant 0 : index
    %44 = vector.load %arg1[%c0_33, %c0_34] : memref<16x384xbf16, #tpu.memory_space<vmem>>, vector<16x256xbf16>
    %c0_35 = arith.constant 0 : index
    %c0_36 = arith.constant 0 : index
    %45 = vector.load %arg10[%c0_35, %c0_36] : memref<256x128xbf16, #tpu.memory_space<vmem>>, vector<256x128xbf16>
    %cst_37 = arith.constant dense<0.000000e+00> : vector<16x128xf32>
    %46 = tpu.matmul %44, %45, %cst_37 {dimension_numbers = #tpu.dot_dimension_numbers<[1], [0], [0], [1], [0, 0, 1, 1], [], []>} : vector<16x256xbf16>, vector<256x128xbf16>, vector<16x128xf32> -> vector<16x128xf32>
    %c0_38 = arith.constant 0 : index
    %c0_39 = arith.constant 0 : index
    %47 = vector.load %arg15[%c0_38, %c0_39] : memref<16x512xbf16, #tpu.memory_space<vmem>>, vector<16x512xbf16>
    %c0_40 = arith.constant 0 : index
    %c0_41 = arith.constant 0 : index
    %48 = vector.load %arg11[%c0_40, %c0_41] : memref<512x128xbf16, #tpu.memory_space<vmem>>, vector<512x128xbf16>
    %cst_42 = arith.constant dense<0.000000e+00> : vector<16x128xf32>
    %49 = tpu.matmul %47, %48, %cst_42 {dimension_numbers = #tpu.dot_dimension_numbers<[1], [0], [0], [1], [0, 0, 1, 1], [], []>} : vector<16x512xbf16>, vector<512x128xbf16>, vector<16x128xf32> -> vector<16x128xf32>
    %50 = arith.addf %46, %49 : vector<16x128xf32>
    %c0_43 = arith.constant 0 : index
    %c0_44 = arith.constant 0 : index
    %51 = vector.load %arg12[%c0_43, %c0_44] : memref<1x128xf32, #tpu.memory_space<vmem>>, vector<1x128xf32>
    %52 = vector.broadcast %51 : vector<1x128xf32> to vector<16x128xf32>
    %53 = arith.addf %50, %52 : vector<16x128xf32>
    %cst_45 = arith.constant 5.000000e-01 : f32
    %54 = vector.broadcast %cst_45 : f32 to vector<16x128xf32>
    %55 = arith.mulf %54, %53 : vector<16x128xf32>
    %cst_46 = arith.constant 0.707106769 : f32
    %56 = vector.broadcast %cst_46 : f32 to vector<16x128xf32>
    %57 = arith.mulf %53, %56 : vector<16x128xf32>
    %58 = math.absf %57 : vector<16x128xf32>
    %cst_47 = arith.constant 0.327591091 : f32
    %59 = vector.broadcast %cst_47 : f32 to vector<16x128xf32>
    %60 = arith.mulf %59, %58 : vector<16x128xf32>
    %cst_48 = arith.constant 1.000000e+00 : f32
    %61 = vector.broadcast %cst_48 : f32 to vector<16x128xf32>
    %62 = arith.addf %61, %60 : vector<16x128xf32>
    %cst_49 = arith.constant 1.000000e+00 : f32
    %63 = vector.broadcast %cst_49 : f32 to vector<16x128xf32>
    %64 = arith.divf %63, %62 : vector<16x128xf32>
    %cst_50 = arith.constant 1.06140542 : f32
    %65 = vector.broadcast %cst_50 : f32 to vector<16x128xf32>
    %66 = arith.mulf %65, %64 : vector<16x128xf32>
    %cst_51 = arith.constant -1.45315206 : f32
    %67 = vector.broadcast %cst_51 : f32 to vector<16x128xf32>
    %68 = arith.addf %66, %67 : vector<16x128xf32>
    %69 = arith.mulf %68, %64 : vector<16x128xf32>
    %cst_52 = arith.constant 1.42141378 : f32
    %70 = vector.broadcast %cst_52 : f32 to vector<16x128xf32>
    %71 = arith.addf %69, %70 : vector<16x128xf32>
    %72 = arith.mulf %71, %64 : vector<16x128xf32>
    %cst_53 = arith.constant -0.284496725 : f32
    %73 = vector.broadcast %cst_53 : f32 to vector<16x128xf32>
    %74 = arith.addf %72, %73 : vector<16x128xf32>
    %75 = arith.mulf %74, %64 : vector<16x128xf32>
    %cst_54 = arith.constant 0.254829586 : f32
    %76 = vector.broadcast %cst_54 : f32 to vector<16x128xf32>
    %77 = arith.addf %75, %76 : vector<16x128xf32>
    %78 = arith.mulf %77, %64 : vector<16x128xf32>
    %cst_55 = arith.constant 0.000000e+00 : f32
    %79 = vector.broadcast %cst_55 : f32 to vector<16x128xf32>
    %80 = arith.subf %79, %58 : vector<16x128xf32>
    %81 = arith.mulf %80, %58 : vector<16x128xf32>
    %82 = math.exp %81 : vector<16x128xf32>
    %83 = arith.mulf %78, %82 : vector<16x128xf32>
    %cst_56 = arith.constant 1.000000e+00 : f32
    %84 = vector.broadcast %cst_56 : f32 to vector<16x128xf32>
    %85 = arith.subf %84, %83 : vector<16x128xf32>
    %cst_57 = arith.constant 0.000000e+00 : f32
    %86 = vector.broadcast %cst_57 : f32 to vector<16x128xf32>
    %87 = arith.cmpf oge, %57, %86 : vector<16x128xf32>
    %cst_58 = arith.constant 0.000000e+00 : f32
    %88 = vector.broadcast %cst_58 : f32 to vector<16x128xf32>
    %89 = arith.subf %88, %85 : vector<16x128xf32>
    %90 = arith.select %87, %85, %89 : vector<16x128xi1>, vector<16x128xf32>
    %cst_59 = arith.constant 1.000000e+00 : f32
    %91 = vector.broadcast %cst_59 : f32 to vector<16x128xf32>
    %92 = arith.addf %91, %90 : vector<16x128xf32>
    %93 = arith.mulf %55, %92 : vector<16x128xf32>
    %c0_60 = arith.constant 0 : index
    %c0_61 = arith.constant 0 : index
    %94 = vector.load %arg13[%c0_60, %c0_61] : memref<1x128xf32, #tpu.memory_space<vmem>>, vector<1x128xf32>
    %95 = vector.broadcast %94 : vector<1x128xf32> to vector<16x128xf32>
    %96 = arith.mulf %93, %95 : vector<16x128xf32>
    %cst_62 = arith.constant dense<0.000000e+00> : vector<16xf32>
    %97 = vector.multi_reduction <add>, %96, %cst_62 [1] : vector<16x128xf32> to vector<16xf32>
    %98 = vector.shape_cast %97 : vector<16xf32> to vector<16x1xf32>
    %c0_63 = arith.constant 0 : index
    %c0_64 = arith.constant 0 : index
    %99 = vector.load %arg14[%c0_63, %c0_64] : memref<16x1xf32, #tpu.memory_space<vmem>>, vector<16x1xf32>
    tpu.vector_store %arg14[%c0_63, %c0_64], %98 {strides = array<i32>} : memref<16x1xf32, #tpu.memory_space<vmem>>, vector<16x1xf32>,
    return
  }
  func.func @transform_0(%arg0: i32) -> (i32, i32) {
    %c0_i32 = arith.constant 0 : i32
    %c0_i32_0 = arith.constant 0 : i32
    return %arg0, %c0_i32 : i32, i32
  }
  func.func @transform_1(%arg0: i32) -> (i32, i32) {
    %c0_i32 = arith.constant 0 : i32
    %c0_i32_0 = arith.constant 0 : i32
    return %arg0, %c0_i32 : i32, i32
  }
  func.func @transform_2(%arg0: i32) -> (i32, i32) {
    %c0_i32 = arith.constant 0 : i32
    %c0_i32_0 = arith.constant 0 : i32
    return %arg0, %c0_i32 : i32, i32
  }
  func.func @transform_3(%arg0: i32) -> (i32, i32) {
    %c0_i32 = arith.constant 0 : i32
    %c0_i32_0 = arith.constant 0 : i32
    %c0_i32_1 = arith.constant 0 : i32
    return %c0_i32, %c0_i32_0 : i32, i32
  }
  func.func @transform_4(%arg0: i32) -> (i32, i32) {
    %c0_i32 = arith.constant 0 : i32
    %c0_i32_0 = arith.constant 0 : i32
    %c0_i32_1 = arith.constant 0 : i32
    return %c0_i32, %c0_i32_0 : i32, i32
  }
  func.func @transform_5(%arg0: i32) -> (i32, i32) {
    %c0_i32 = arith.constant 0 : i32
    %c0_i32_0 = arith.constant 0 : i32
    %c0_i32_1 = arith.constant 0 : i32
    return %c0_i32, %c0_i32_0 : i32, i32
  }
  func.func @transform_6(%arg0: i32) -> (i32, i32) {
    %c0_i32 = arith.constant 0 : i32
    %c0_i32_0 = arith.constant 0 : i32
    %c0_i32_1 = arith.constant 0 : i32
    return %c0_i32, %c0_i32_0 : i32, i32
  }
  func.func @transform_7(%arg0: i32) -> (i32, i32) {
    %c0_i32 = arith.constant 0 : i32
    %c0_i32_0 = arith.constant 0 : i32
    %c0_i32_1 = arith.constant 0 : i32
    return %c0_i32, %c0_i32_0 : i32, i32
  }
  func.func @transform_8(%arg0: i32) -> (i32, i32) {
    %c0_i32 = arith.constant 0 : i32
    %c0_i32_0 = arith.constant 0 : i32
    %c0_i32_1 = arith.constant 0 : i32
    return %c0_i32, %c0_i32_0 : i32, i32
  }
  func.func @transform_9(%arg0: i32) -> (i32, i32) {
    %c0_i32 = arith.constant 0 : i32
    %c0_i32_0 = arith.constant 0 : i32
    %c0_i32_1 = arith.constant 0 : i32
    return %c0_i32, %c0_i32_0 : i32, i32
  }
  func.func @transform_10(%arg0: i32) -> (i32, i32) {
    %c0_i32 = arith.constant 0 : i32
    %c0_i32_0 = arith.constant 0 : i32
    %c0_i32_1 = arith.constant 0 : i32
    return %c0_i32, %c0_i32_0 : i32, i32
  }
  func.func @transform_11(%arg0: i32) -> (i32, i32) {
    %c0_i32 = arith.constant 0 : i32
    %c0_i32_0 = arith.constant 0 : i32
    %c0_i32_1 = arith.constant 0 : i32
    return %c0_i32, %c0_i32_0 : i32, i32
  }
  func.func @transform_12(%arg0: i32) -> (i32, i32) {
    %c0_i32 = arith.constant 0 : i32
    %c0_i32_0 = arith.constant 0 : i32
    %c0_i32_1 = arith.constant 0 : i32
    return %c0_i32, %c0_i32_0 : i32, i32
  }
  func.func @transform_13(%arg0: i32) -> (i32, i32) {
    %c0_i32 = arith.constant 0 : i32
    %c0_i32_0 = arith.constant 0 : i32
    return %arg0, %c0_i32 : i32, i32
  }
}

</mosaic_0001>

<bundles_post_ra>
// kernel: tpu_custom_call.1
= control target key start
LH: loop header
LB: loop body
LE: loop exit
PB: predicated region body
PF: predicated region fallthrough
CT: control target
= control target key end

     0   :  { %18 = vsyncpa [#allocation4], 0  ;;  %s2234_s0 = inlined_call_operand.hbm [shape: bf16[16,384], index: 0, kind: input, shape index: {}]   ;;  %s2235_s1 = inlined_call_operand.hbm [shape: bf16[16,256], index: 1, kind: input, shape index: {}]   ;;  %s2236_s2 = inlined_call_operand.hbm [shape: bf16[16,256], index: 2, kind: input, shape index: {}]   ;;  %s2237_s3 = inlined_call_operand.hbm [shape: bf16[128,128], index: 3, kind: input, shape index: {}]   ;;  %s2238_s4 = inlined_call_operand.hbm [shape: bf16[128,128], index: 4, kind: input, shape index: {}]   ;;  %s2239_s5 = inlined_call_operand.hbm [shape: bf16[256,128], index: 5, kind: input, shape index: {}]   ;;  %s2240_s6 = inlined_call_operand.vmem [shape: f32[1,128], index: 6, kind: input, shape index: {}]   ;;  %s2241_s7 = inlined_call_operand.hbm [shape: bf16[128,128], index: 7, kind: input, shape index: {}]   ;;  %s2242_s8 = inlined_call_operand.vmem [shape: f32[1,128], index: 8, kind: input, shape index: {}]   ;;  %s2243_s9 = inlined_call_operand.hbm [shape: bf16[256,128], index: 9, kind: input, shape index: {}]   ;;  %s2244_s10 = inlined_call_operand.hbm [shape: bf16[512,128], index: 10, kind: input, shape index: {}]   ;;  %s2245_s11 = inlined_call_operand.vmem [shape: f32[1,128], index: 11, kind: input, shape index: {}]   ;;  %s2246_s12 = inlined_call_operand.vmem [shape: f32[1,128], index: 12, kind: input, shape index: {}]   ;;  %s2247_s13 = inlined_call_operand.vmem [shape: f32[16,1], index: 13, kind: output, shape index: {}]  }
   0x1   :  { %19 = vsyncpa [#allocation6], 0 }
   0x2   :  { %20 = vsyncpa [#allocation9], 0 }
   0x3   :  { %21 = vsyncpa [#allocation12], 0 }
   0x4   :  { %22 = vsyncpa [#allocation15], 0  ;;  %s1960_s25 = smov [#allocation5]   ;;  %s1752_s29 = scalar_lea.hbm %s2235_s1, 256 }
   0x5   :  { %s40_s26 = sshll.u32 %s1960_s25, 4  ;;  %p1753_p0 = scmp.ne.s32.totalorder %s2235_s1, %s1752_s29  ;;  %s41_s26 = int_to_ptr.vmem [resolvable:$true] %s40_s26 }
   0x6   :  { %p1756_p1 = scmp.lt.u32.totalorder %s1752_s29, %s2235_s1 }
   0x8   :  { %p1758_p2 = pnand %p1756_p1, %p1753_p0 }
   0xa   :  { %1761 = shalt.err (!%p1758_p2)
}
   0xb   :  { %s1762_s17 = scalar_lea.vmem %s41_s26, 256  ;;  %p1767_p4 = scmp.lt.s32.totalorder %s41_s26, %s41_s26 }
   0xc   :  { %p1763_p3 = scmp.ne.s32.totalorder %s41_s26, %s1762_s17  ;;  %p1768_p5 = scmp.lt.s32.totalorder %s1762_s17, %s1762_s17 }
   0xe   :  { %p1769_p6 = por %p1768_p5, %p1767_p4 }
  0x10   :  { %p1770_p7 = pnand %p1769_p6, %p1763_p3 }
  0x12   :  { %1773 = shalt.err (!%p1770_p7)
}
  0x13   :  { %s1961_s18 = smov 128   ;;  %s1962_s19 = smov 8  }
  0x14   :  { %46 = dma.hbm_to_vmem [thread:$0]  %s2235_s1, 256, %s41_s26, [#allocation6], %s1961_s18, %s1961_s18, %s1962_s19  }
  0x15   :  { %s1963_s22 = smov [#allocation8]   ;;  %s1774_s27 = scalar_lea.hbm %s2237_s3, 1024 }
  0x16   :  { %s64_s23 = sshll.u32 %s1963_s22, 4  ;;  %p1775_p8 = scmp.ne.s32.totalorder %s2237_s3, %s1774_s27  ;;  %s65_s23 = int_to_ptr.vmem [resolvable:$true] %s64_s23 }
  0x17   :  { %p1778_p9 = scmp.lt.u32.totalorder %s1774_s27, %s2237_s3 }
  0x19   :  { %p1780_p10 = pnand %p1778_p9, %p1775_p8 }
  0x1b   :  { %1783 = shalt.err (!%p1780_p10)
}
  0x1c   :  { %s1784_s15 = scalar_lea.vmem %s65_s23, 1024  ;;  %p1789_p12 = scmp.lt.s32.totalorder %s65_s23, %s65_s23 }
  0x1d   :  { %p1785_p11 = scmp.ne.s32.totalorder %s65_s23, %s1784_s15  ;;  %p1790_p13 = scmp.lt.s32.totalorder %s1784_s15, %s1784_s15 }
  0x1f   :  { %p1791_p0 = por %p1790_p13, %p1789_p12 }
  0x21   :  { %p1792_p1 = pnand %p1791_p0, %p1785_p11 }
  0x23   :  { %1795 = shalt.err (!%p1792_p1)
}
  0x24   :  { %s1964_s1 = smov 64   ;;  %s1965_s26 = smov 4  }
  0x25   :  { %70 = dma.hbm_to_vmem [thread:$0]  %s2237_s3, 1024, %s65_s23, [#allocation9], %s1964_s1, %s1964_s1, %s1965_s26  }
  0x26   :  { %s1966_s20 = smov [#allocation11]   ;;  %s1967_s22 = smov [#allocation14]  }
  0x27   :  { %s88_s21 = sshll.u32 %s1966_s20, 4  ;;  %s116_s24 = sshll.u32 %s1967_s22, 4  ;;  %s89_s21 = int_to_ptr.vmem [resolvable:$true] %s88_s21  ;;  %s2077_s24 = int_to_ptr.vmem [resolvable:$true] %s116_s24 }
  0x28   :  { %s1796_s28 = scalar_lea.hbm %s2239_s5, 2048 }
  0x29   :  { %p1797_p2 = scmp.ne.s32.totalorder %s2239_s5, %s1796_s28  ;;  %p1800_p3 = scmp.lt.u32.totalorder %s1796_s28, %s2239_s5 }
  0x2b   :  { %p1802_p4 = pnand %p1800_p3, %p1797_p2 }
  0x2d   :  { %1805 = shalt.err (!%p1802_p4)
}
  0x2e   :  { %s1806_s3 = scalar_lea.vmem %s89_s21, 2048  ;;  %p1811_p6 = scmp.lt.s32.totalorder %s89_s21, %s89_s21 }
  0x2f   :  { %p1807_p5 = scmp.ne.s32.totalorder %s89_s21, %s1806_s3  ;;  %p1812_p7 = scmp.lt.s32.totalorder %s1806_s3, %s1806_s3 }
  0x31   :  { %p1813_p8 = por %p1812_p7, %p1811_p6 }
  0x33   :  { %p1814_p9 = pnand %p1813_p8, %p1807_p5 }
  0x35   :  { %1817 = shalt.err (!%p1814_p9)
}
  0x36   :  { %94 = dma.hbm_to_vmem [thread:$0]  %s2239_s5, 2048, %s89_s21, [#allocation12], %s1964_s1, %s1964_s1, %s1965_s26  }
  0x37   :  { %s1818_s22 = scalar_lea.hbm %s2243_s9, 2048 }
  0x38   :  { %p1819_p10 = scmp.ne.s32.totalorder %s2243_s9, %s1818_s22  ;;  %p1822_p11 = scmp.lt.u32.totalorder %s1818_s22, %s2243_s9 }
  0x3a   :  { %p1824_p12 = pnand %p1822_p11, %p1819_p10 }
  0x3c   :  { %1827 = shalt.err (!%p1824_p12)
}
  0x3d   :  { %s1828_s30 = scalar_lea.vmem %s2077_s24, 2048  ;;  %p1833_p0 = scmp.lt.s32.totalorder %s2077_s24, %s2077_s24 }
  0x3e   :  { %p1829_p13 = scmp.ne.s32.totalorder %s2077_s24, %s1828_s30  ;;  %p1834_p1 = scmp.lt.s32.totalorder %s1828_s30, %s1828_s30 }
  0x40   :  { %p1835_p2 = por %p1834_p1, %p1833_p0 }
  0x42   :  { %p1836_p3 = pnand %p1835_p2, %p1829_p13 }
  0x44   :  { %1839 = shalt.err (!%p1836_p3)
}
  0x45   :  { %122 = dma.hbm_to_vmem [thread:$0]  %s2243_s9, 2048, %s2077_s24, [#allocation15], %s1964_s1, %s1964_s1, %s1965_s26  }
  0x46   :  { %s1968_s14 = smov [#allocation3]   ;;  %s1840_s16 = scalar_lea.hbm %s2234_s0, 384 }
  0x47   :  { %s28_s15 = sshll.u32 %s1968_s14, 4  ;;  %p1841_p4 = scmp.ne.s32.totalorder %s2234_s0, %s1840_s16  ;;  %s29_s15 = int_to_ptr.vmem [resolvable:$true] %s28_s15 }
  0x48   :  { %p1844_p5 = scmp.lt.u32.totalorder %s1840_s16, %s2234_s0 }
  0x4a   :  { %p1846_p6 = pnand %p1844_p5, %p1841_p4 }
  0x4c   :  { %1849 = shalt.err (!%p1846_p6)
}
  0x4d   :  { %s1850_s27 = scalar_lea.vmem %s29_s15, 384  ;;  %p1855_p8 = scmp.lt.s32.totalorder %s29_s15, %s29_s15 }
  0x4e   :  { %p1851_p7 = scmp.ne.s32.totalorder %s29_s15, %s1850_s27  ;;  %p1856_p9 = scmp.lt.s32.totalorder %s1850_s27, %s1850_s27 }
  0x50   :  { %p1857_p10 = por %p1856_p9, %p1855_p8 }
  0x52   :  { %p1858_p11 = pnand %p1857_p10, %p1851_p7 }
  0x54   :  { %1861 = shalt.err (!%p1858_p11)
}
  0x55   :  { %s1969_s9 = smov 192   ;;  %s1970_s24 = smov 12  }
  0x56   :  { %34 = dma.hbm_to_vmem [thread:$0]  %s2234_s0, 384, %s29_s15, [#allocation4], %s1969_s9, %s1969_s9, %s1970_s24  }
  0x57   :  { %s1971_s30 = smov [#allocation7]   ;;  %s1972_s21 = smov [#allocation10]  }
  0x58   :  { %s52_s5 = sshll.u32 %s1971_s30, 4  ;;  %s76_s14 = sshll.u32 %s1972_s21, 4  ;;  %s53_s5 = int_to_ptr.vmem [resolvable:$true] %s52_s5  ;;  %s77_s14 = int_to_ptr.vmem [resolvable:$true] %s76_s14 }
  0x59   :  { %s1862_s16 = scalar_lea.hbm %s2236_s2, 256 }
  0x5a   :  { %p1863_p12 = scmp.ne.s32.totalorder %s2236_s2, %s1862_s16  ;;  %p1866_p13 = scmp.lt.u32.totalorder %s1862_s16, %s2236_s2 }
  0x5c   :  { %p1868_p0 = pnand %p1866_p13, %p1863_p12 }
  0x5e   :  { %1871 = shalt.err (!%p1868_p0)
}
  0x5f   :  { %s1872_s0 = scalar_lea.vmem %s53_s5, 256  ;;  %p1877_p2 = scmp.lt.s32.totalorder %s53_s5, %s53_s5 }
  0x60   :  { %p1873_p1 = scmp.ne.s32.totalorder %s53_s5, %s1872_s0  ;;  %p1878_p3 = scmp.lt.s32.totalorder %s1872_s0, %s1872_s0 }
  0x62   :  { %p1879_p4 = por %p1878_p3, %p1877_p2 }
  0x64   :  { %p1880_p5 = pnand %p1879_p4, %p1873_p1 }
  0x66   :  { %1883 = shalt.err (!%p1880_p5)
}
  0x67   :  { %58 = dma.hbm_to_vmem [thread:$0]  %s2236_s2, 256, %s53_s5, [#allocation6], %s1961_s18, %s1961_s18, %s1962_s19  }
  0x68   :  { %s1884_s28 = scalar_lea.hbm %s2238_s4, 1024 }
  0x69   :  { %p1885_p6 = scmp.ne.s32.totalorder %s2238_s4, %s1884_s28  ;;  %p1888_p7 = scmp.lt.u32.totalorder %s1884_s28, %s2238_s4 }
  0x6b   :  { %p1890_p8 = pnand %p1888_p7, %p1885_p6 }
  0x6d   :  { %1893 = shalt.err (!%p1890_p8)
}
  0x6e   :  { %s1894_s23 = scalar_lea.vmem %s77_s14, 1024  ;;  %p1899_p10 = scmp.lt.s32.totalorder %s77_s14, %s77_s14 }
  0x6f   :  { %p1895_p9 = scmp.ne.s32.totalorder %s77_s14, %s1894_s23  ;;  %p1900_p11 = scmp.lt.s32.totalorder %s1894_s23, %s1894_s23 }
  0x71   :  { %p1901_p12 = por %p1900_p11, %p1899_p10 }
  0x73   :  { %p1902_p13 = pnand %p1901_p12, %p1895_p9 }
  0x75   :  { %1905 = shalt.err (!%p1902_p13)
}
  0x76   :  { %82 = dma.hbm_to_vmem [thread:$0]  %s2238_s4, 1024, %s77_s14, [#allocation9], %s1964_s1, %s1964_s1, %s1965_s26  }
  0x77   :  { %s1973_s19 = smov [#allocation13]   ;;  %s1974_s16 = smov [#allocation16]  }
  0x78   :  { %s102_s5 = sshll.u32 %s1973_s19, 4  ;;  %s128_s17 = sshll.u32 %s1974_s16, 4  ;;  %s103_s5 = int_to_ptr.vmem [resolvable:$true] %s102_s5  ;;  %s129_s17 = int_to_ptr.vmem [resolvable:$true] %s128_s17 }
  0x79   :  { %s1906_s25 = scalar_lea.hbm %s2241_s7, 1024 }
  0x7a   :  { %p1907_p0 = scmp.ne.s32.totalorder %s2241_s7, %s1906_s25  ;;  %p1910_p1 = scmp.lt.u32.totalorder %s1906_s25, %s2241_s7 }
  0x7c   :  { %p1912_p2 = pnand %p1910_p1, %p1907_p0 }
  0x7e   :  { %1915 = shalt.err (!%p1912_p2)
}
  0x7f   :  { %s1916_s4 = scalar_lea.vmem %s103_s5, 1024  ;;  %p1921_p4 = scmp.lt.s32.totalorder %s103_s5, %s103_s5 }
  0x80   :  { %p1917_p3 = scmp.ne.s32.totalorder %s103_s5, %s1916_s4  ;;  %p1922_p5 = scmp.lt.s32.totalorder %s1916_s4, %s1916_s4 }
  0x82   :  { %p1923_p6 = por %p1922_p5, %p1921_p4 }
  0x84   :  { %p1924_p7 = pnand %p1923_p6, %p1917_p3 }
  0x86   :  { %1927 = shalt.err (!%p1924_p7)
}
  0x87   :  { %108 = dma.hbm_to_vmem [thread:$0]  %s2241_s7, 1024, %s103_s5, [#allocation12], %s1964_s1, %s1964_s1, %s1965_s26  }
  0x88   :  { %s1928_s30 = scalar_lea.hbm %s2244_s10, 4096 }
  0x89   :  { %p1929_p8 = scmp.ne.s32.totalorder %s2244_s10, %s1928_s30  ;;  %p1932_p9 = scmp.lt.u32.totalorder %s1928_s30, %s2244_s10 }
  0x8b   :  { %p1934_p10 = pnand %p1932_p9, %p1929_p8 }
  0x8d   :  { %1937 = shalt.err (!%p1934_p10)
}
  0x8e   :  { %s1938_s18 = scalar_lea.vmem %s129_s17, 4096  ;;  %p1943_p12 = scmp.lt.s32.totalorder %s129_s17, %s129_s17 }
  0x8f   :  { %p1939_p11 = scmp.ne.s32.totalorder %s129_s17, %s1938_s18  ;;  %p1944_p13 = scmp.lt.s32.totalorder %s1938_s18, %s1938_s18 }
  0x91   :  { %p1945_p0 = por %p1944_p13, %p1943_p12 }
  0x93   :  { %p1946_p1 = pnand %p1945_p0, %p1939_p11 }
  0x95   :  { %1949 = shalt.err (!%p1946_p1)
}
  0x96   :  { %134 = dma.hbm_to_vmem [thread:$0]  %s2244_s10, 4096, %s129_s17, [#allocation15], %s1964_s1, %s1964_s1, %s1965_s26  }
  0x97   :  { %1950 = dma.done.wait [#allocation4], 384  }
  0x98   :  { %1951 = vsyncadd [#allocation4], 4294966912 }
  0x99   :  { %1952 = dma.done.wait [#allocation6], 512  }
  0x9a   :  { %1953 = vsyncadd [#allocation6], 4294966784 }
  0x9b   :  { %1954 = dma.done.wait [#allocation9], 2048  }
  0x9c   :  { %1955 = vsyncadd [#allocation9], 4294965248 }
  0x9d   :  { %1956 = dma.done.wait [#allocation12], 3072  }
  0x9e   :  { %1957 = vsyncadd [#allocation12], 4294964224 }
  0x9f   :  { %1958 = dma.done.wait [#allocation15], 6144  }
  0xa0   :  { %1959 = vsyncadd [#allocation15], 4294961152  ;;  %v1975_v0 = vmov 0.0   ;;  %vm1976_vm0 = vmmov 0   ;;  %v1639_v1 = vld [vmem:[#allocation8] sm:$0xff]   ;;  %v1641_v3 = vld [vmem:[#allocation8 + $0x8] sm:$0xff]  }
  0xa1   :  { %1562 = vmatprep.subr.bf16.mxu0 %v1975_v0  ;;  %1582 = vmatprep.subr.bf16.mxu1 %v1975_v0  ;;  %v1640_v2 = vld [vmem:[#allocation10] sm:$0xff]   ;;  %v1642_v4 = vld [vmem:[#allocation10 + $0x8] sm:$0xff]   ;;  %v1643_v5 = vld [vmem:[#allocation8 + $0x10] sm:$0xff]   ;;  %vm1336_vm3 = vcmask 7168  }
  0xa2   :  { %1578 = vmatprep.mubr.msk.bf16.mxu0 %vm1976_vm0, %v1975_v0  ;;  %1598 = vmatprep.mubr.msk.bf16.mxu1 %vm1976_vm0, %v1975_v0  ;;  %v1644_v6 = vld [vmem:[#allocation10 + $0x10] sm:$0xff]   ;;  %v1645_v7 = vld [vmem:[#allocation8 + $0x18] sm:$0xff]   ;;  %v1647_v9 = vld [vmem:[#allocation8 + $0x20] sm:$0xff]  }
  0xa3   :  { %1563 = vmatpush3.bf16.msra.mxu0 %v1639_v1  ;;  %1583 = vmatpush3.bf16.msra.mxu1 %v1640_v2  ;;  %v1646_v8 = vld [vmem:[#allocation10 + $0x18] sm:$0xff]   ;;  %v1648_v10 = vld [vmem:[#allocation10 + $0x20] sm:$0xff]   ;;  %v1649_v13 = vld [vmem:[#allocation8 + $0x28] sm:$0xff]  }
  0xa4   :  { %1564 = vmatprep.subr.bf16.mxu0 %v1975_v0  ;;  %1584 = vmatprep.subr.bf16.mxu1 %v1975_v0  ;;  %v167_v11 = vld [vmem:[#allocation5] sm:$0xf]  ;;  %v169_v12 = vld [vmem:[#allocation5 + $0x4] sm:$0xf]  ;;  %v1650_v16 = vld [vmem:[#allocation10 + $0x28] sm:$0xff]  }
  0xa5   :  { %v179_v14 = vunpack.c.l.bf16 %v169_v12  ;;  %v171_v15 = vunpack.c.l.bf16 %v167_v11  ;;  %v170_v17 = vld [vmem:[#allocation5 + $0xc] sm:$0xf]  ;;  %v168_v18 = vld [vmem:[#allocation5 + $0x8] sm:$0xf]  ;;  %v1651_v21 = vld [vmem:[#allocation8 + $0x30] sm:$0xff]  }
  0xa6   :  { %v180_v19 = vunpack.c.l.bf16 %v170_v17  ;;  %v172_v20 = vunpack.c.l.bf16 %v168_v18  ;;  %v1652_v22 = vld [vmem:[#allocation10 + $0x30] sm:$0xff]   ;;  %v1653_v23 = vld [vmem:[#allocation8 + $0x38] sm:$0xff]   ;;  %v1657_v25 = vld [vmem:[#allocation11 + $0x40] sm:$0xff]   ;;  %v1348_v26 = vcombine.low %v167_v11, %v168_v18  ;;  %v1357_v28 = vcombine.low %v169_v12, %v170_v17 }
  0xa7   :  { %1565 = vmatpush3.bf16.msra.mxu0 %v1641_v3  ;;  %1585 = vmatpush3.bf16.msra.mxu1 %v1642_v4  ;;  %v1654_v24 = vld [vmem:[#allocation10 + $0x38] sm:$0xff]   ;;  %v1658_v27 = vld [vmem:[#allocation11] sm:$0xff]   ;;  %v1660_v30 = vld [vmem:[#allocation11 + $0x48] sm:$0xff]  }
  0xa8   :  { %1566 = vmatprep.subr.bf16.mxu0 %v1975_v0  ;;  %1586 = vmatprep.subr.bf16.mxu1 %v1975_v0  ;;  %v1659_v29 = vld [vmem:[#allocation13] sm:$0xff]   ;;  %v1661_v31 = vld [vmem:[#allocation11 + $0x8] sm:$0xff]   ;;  %v1663_v33 = vld [vmem:[#allocation11 + $0x50] sm:$0xff]  }
  0xa9   :  { %181 = vadd.xlane.f32.xlu0 %v179_v14  ;;  %173 = vadd.xlane.f32.xlu1 %v171_v15  ;;  %v1662_v32 = vld [vmem:[#allocation13 + $0x8] sm:$0xff]   ;;  %v1664_v34 = vld [vmem:[#allocation11 + $0x10] sm:$0xff]   ;;  %v1666_v36 = vld [vmem:[#allocation11 + $0x58] sm:$0xff]  }
  0xaa   :  { %v1665_v35 = vld [vmem:[#allocation13 + $0x10] sm:$0xff]   ;;  %v1667_v37 = vld [vmem:[#allocation11 + $0x18] sm:$0xff]   ;;  %v1669_v40 = vld [vmem:[#allocation11 + $0x60] sm:$0xff]  }
  0xab   :  { %1567 = vmatpush3.bf16.msra.mxu0 %v1643_v5  ;;  %1587 = vmatpush3.bf16.msra.mxu1 %v1644_v6  ;;  %v1668_v38 = vld [vmem:[#allocation13 + $0x18] sm:$0xff]   ;;  %v1670_v41 = vld [vmem:[#allocation11 + $0x20] sm:$0xff]   ;;  %v1672_v43 = vld [vmem:[#allocation11 + $0x68] sm:$0xff]  }
  0xac   :  { %1568 = vmatprep.subr.bf16.mxu0 %v1975_v0  ;;  %1588 = vmatprep.subr.bf16.mxu1 %v1975_v0  ;;  %v1683_v39 = vld [vmem:[#allocation7 + $0x4] ss:$8 sps:$4 sm:$0xff]   ;;  %v1671_v42 = vld [vmem:[#allocation13 + $0x20] sm:$0xff]   ;;  %v1673_v44 = vld [vmem:[#allocation11 + $0x28] sm:$0xff]  }
  0xad   :  { %183 = vadd.xlane.f32.xlu0 %v180_v19  ;;  %175 = vadd.xlane.f32.xlu1 %v172_v20  ;;  %v1674_v45 = vld [vmem:[#allocation13 + $0x28] sm:$0xff]   ;;  %v1675_v46 = vld [vmem:[#allocation11 + $0x70] sm:$0xff]   ;;  %v1678_v49 = vld [vmem:[#allocation11 + $0x78] sm:$0xff]  }
  0xae   :  { %v1676_v47 = vld [vmem:[#allocation11 + $0x30] sm:$0xff]   ;;  %v1679_v50 = vld [vmem:[#allocation11 + $0x38] sm:$0xff]   ;;  %v1685_v52 = vld [vmem:[#allocation16 + $0x40] sm:$0xff]  }
  0xaf   :  { %1569 = vmatpush3.bf16.msra.mxu0 %v1645_v7  ;;  %1589 = vmatpush3.bf16.msra.mxu1 %v1646_v8  ;;  %v1677_v48 = vld [vmem:[#allocation13 + $0x30] sm:$0xff]   ;;  %v1680_v51 = vld [vmem:[#allocation13 + $0x38] sm:$0xff]   ;;  %v1686_v55 = vld [vmem:[#allocation16] sm:$0xff]  }
  0xb0   :  { %1570 = vmatprep.subr.bf16.mxu0 %v1975_v0  ;;  %1590 = vmatprep.subr.bf16.mxu1 %v1975_v0  ;;  %v1681_v53 = vld [vmem:[#allocation7] ss:$8 sps:$4 sm:$0xff]   ;;  %v1687_v56 = vld [vmem:[#allocation16 + $0x48] sm:$0xff]   ;;  %v1693_v62 = vld [vmem:[#allocation16 + $0x60] sm:$0xff]  }
  0xb1   :  { %v1684_v54 = vld [vmem:[#allocation3 + $0x8] ss:$12 sps:$4 sm:$0xff]   ;;  %v1688_v57 = vld [vmem:[#allocation16 + $0x8] sm:$0xff]   ;;  %v1694_v63 = vld [vmem:[#allocation16 + $0x20] sm:$0xff]  }
  0xb2   :  { %v1689_v58 = vld [vmem:[#allocation16 + $0x50] sm:$0xff]   ;;  %v1691_v60 = vld [vmem:[#allocation16 + $0x58] sm:$0xff]   ;;  %v1696_v1 = vld [vmem:[#allocation16 + $0x28] sm:$0xff]  }
  0xb3   :  { %1571 = vmatpush3.bf16.msra.mxu0 %v1647_v9  ;;  %1591 = vmatpush3.bf16.msra.mxu1 %v1648_v10  ;;  %v1690_v59 = vld [vmem:[#allocation16 + $0x10] sm:$0xff]   ;;  %v1692_v61 = vld [vmem:[#allocation16 + $0x18] sm:$0xff]   ;;  %v1701_v6 = vld [vmem:[#allocation14 + $0x40] sm:$0xff]  }
  0xb4   :  { %1572 = vmatprep.subr.bf16.mxu0 %v1975_v0  ;;  %1592 = vmatprep.subr.bf16.mxu1 %v1975_v0  ;;  %v1697_v2 = vld [vmem:[#allocation16 + $0x70] sm:$0xff]   ;;  %v1699_v4 = vld [vmem:[#allocation16 + $0x78] sm:$0xff]   ;;  %v1702_v7 = vld [vmem:[#allocation16 + $0xc0] sm:$0xff]  }
  0xb5   :  { %v1698_v3 = vld [vmem:[#allocation16 + $0x30] sm:$0xff]   ;;  %v1700_v5 = vld [vmem:[#allocation16 + $0x38] sm:$0xff]   ;;  %v1704_v8 = vld [vmem:[#allocation16 + $0x80] sm:$0xff]  }
  0xb6   :  { %v1706_v9 = vld [vmem:[#allocation16 + $0xc8] sm:$0xff]   ;;  %v1710_v11 = vld [vmem:[#allocation16 + $0xd0] sm:$0xff]   ;;  %v1716_v14 = vld [vmem:[#allocation16 + $0x98] sm:$0xff]  }
  0xb7   :  { %1573 = vmatpush3.bf16.msra.mxu0 %v1649_v13  ;;  %1593 = vmatpush3.bf16.msra.mxu1 %v1650_v16  ;;  %v1708_v10 = vld [vmem:[#allocation16 + $0x88] sm:$0xff]   ;;  %v1712_v12 = vld [vmem:[#allocation16 + $0x90] sm:$0xff]   ;;  %v1714_v13 = vld [vmem:[#allocation16 + $0xd8] sm:$0xff]  }
  0xb8   :  { %1574 = vmatprep.subr.bf16.mxu0 %v1975_v0  ;;  %1594 = vmatprep.subr.bf16.mxu1 %v1975_v0  ;;  %v1718_v15 = vld [vmem:[#allocation16 + $0xe0] sm:$0xff]   ;;  %v1722_v17 = vld [vmem:[#allocation16 + $0xe8] sm:$0xff]   ;;  %v1726_v19 = vld [vmem:[#allocation16 + $0xf0] sm:$0xff]  }
  0xb9   :  { %v1720_v16 = vld [vmem:[#allocation16 + $0xa0] sm:$0xff]   ;;  %v1724_v18 = vld [vmem:[#allocation16 + $0xa8] sm:$0xff]   ;;  %v1728_v20 = vld [vmem:[#allocation16 + $0xb0] sm:$0xff]  }
  0xbb   :  { %1575 = vmatpush3.bf16.msra.mxu0 %v1651_v21  ;;  %1595 = vmatpush3.bf16.msra.mxu1 %v1652_v22  ;;  %v1730_v21 = vld [vmem:[#allocation16 + $0xf8] sm:$0xff]  }
  0xbc   :  { %1576 = vmatprep.subr.bf16.mxu0 %v1975_v0  ;;  %1596 = vmatprep.subr.bf16.mxu1 %v1975_v0  ;;  %v1732_v22 = vld [vmem:[#allocation16 + $0xb8] sm:$0xff]  }
  0xbf   :  { %1577 = vmatpush3.bf16.msra.mxu0 %v1653_v23  ;;  %1597 = vmatpush3.bf16.msra.mxu1 %v1654_v24 }
  0xc0   :  { %1465 = vmatprep.subr.bf16.mxu0 %v1657_v25  ;;  %1602 = vmatprep.subr.bf16.mxu1 %v1975_v0 }
  0xc2   :  { %1579 = vmatmul.mubr.bf16.vlgmr.msra.gmra.mrb[0].mxu0 %v1348_v26  ;;  %1599 = vmatmul.mubr.bf16.vlgmr.msra.gmra.mrb[0].mxu1 %v1357_v28 }
  0xc3   :  { %1466 = vmatpush3.bf16.msra.mxu0 %v1658_v27  ;;  %1603 = vmatpush3.bf16.msra.mxu1 %v1659_v29 }
  0xc4   :  { %1467 = vmatprep.subr.bf16.mxu0 %v1660_v30  ;;  %1604 = vmatprep.subr.bf16.mxu1 %v1975_v0 }
  0xc5   :  { %1618 = vmatprep.mubr.msk.bf16.mxu1 %vm1976_vm0, %v1975_v0  ;;  %600 = vmatprep.mubr.bf16.mxu0 %v1683_v39 }
  0xc7   :  { %1468 = vmatpush3.bf16.msra.mxu0 %v1661_v31  ;;  %1605 = vmatpush3.bf16.msra.mxu1 %v1662_v32 }
  0xc8   :  { %1469 = vmatprep.subr.bf16.mxu0 %v1663_v33  ;;  %1606 = vmatprep.subr.bf16.mxu1 %v1975_v0 }
  0xcb   :  { %1470 = vmatpush3.bf16.msra.mxu0 %v1664_v34  ;;  %1607 = vmatpush3.bf16.msra.mxu1 %v1665_v35 }
  0xcc   :  { %1471 = vmatprep.subr.bf16.mxu0 %v1666_v36  ;;  %1608 = vmatprep.subr.bf16.mxu1 %v1975_v0 }
  0xcf   :  { %1472 = vmatpush3.bf16.msra.mxu0 %v1667_v37  ;;  %1609 = vmatpush3.bf16.msra.mxu1 %v1668_v38 }
  0xd0   :  { %1473 = vmatprep.subr.bf16.mxu0 %v1669_v40  ;;  %1610 = vmatprep.subr.bf16.mxu1 %v1975_v0 }
  0xd3   :  { %1474 = vmatpush3.bf16.msra.mxu0 %v1670_v41  ;;  %1611 = vmatpush3.bf16.msra.mxu1 %v1671_v42 }
  0xd4   :  { %1475 = vmatprep.subr.bf16.mxu0 %v1672_v43  ;;  %1612 = vmatprep.subr.bf16.mxu1 %v1975_v0 }
  0xd7   :  { %1476 = vmatpush3.bf16.msra.mxu0 %v1673_v44  ;;  %1613 = vmatpush3.bf16.msra.mxu1 %v1674_v45 }
  0xd8   :  { %1477 = vmatprep.subr.bf16.mxu0 %v1675_v46  ;;  %1614 = vmatprep.subr.bf16.mxu1 %v1975_v0 }
  0xdb   :  { %1478 = vmatpush3.bf16.msra.mxu0 %v1676_v47  ;;  %1615 = vmatpush3.bf16.msra.mxu1 %v1677_v48 }
  0xdc   :  { %1479 = vmatprep.subr.bf16.mxu0 %v1678_v49  ;;  %1616 = vmatprep.subr.bf16.mxu1 %v1975_v0  ;;  %v1695_v0 = vld [vmem:[#allocation16 + $0x68] sm:$0xff]   ;;  %v1703_v49 = vld [vmem:[#allocation14] sm:$0xff]  }
  0xdf   :  { %1480 = vmatpush3.bf16.msra.mxu0 %v1679_v50  ;;  %1617 = vmatpush3.bf16.msra.mxu1 %v1680_v51  ;;  %v1735_v50 = vld [vmem:[#allocation3 + $0x4] ss:$12 sps:$4 sm:$0xff]  }
  0xe0   :  { %1496 = vmatprep.subr.bf16.mxu0 %v1685_v52  ;;  %1518 = vmatprep.subr.bf16.mxu1 %v1702_v7  ;;  %v1705_v51 = vld [vmem:[#allocation14 + $0x48] sm:$0xff]  }
  0xe1   :  { %v1707_v52 = vld [vmem:[#allocation14 + $0x8] sm:$0xff]  }
  0xe2   :  { %601 = vmatmul.mubr.bf16.vlgmr.msra.gmra.mrb[4].mxu0 %v1681_v53  ;;  %1619 = vmatmul.mubr.bf16.vlgmr.msra.gmra.mrb[4].mxu1 %v1684_v54  ;;  %v1709_v53 = vld [vmem:[#allocation14 + $0x50] sm:$0xff]  }
  0xe3   :  { %1497 = vmatpush3.bf16.msra.mxu0 %v1686_v55  ;;  %1519 = vmatpush3.bf16.msra.mxu1 %v1704_v8  ;;  %v1711_v54 = vld [vmem:[#allocation14 + $0x10] sm:$0xff]   ;;  %v1713_v55 = vld [vmem:[#allocation14 + $0x58] sm:$0xff]  }
  0xe4   :  { %1498 = vmatprep.subr.bf16.mxu0 %v1687_v56  ;;  %1520 = vmatprep.subr.bf16.mxu1 %v1706_v9  ;;  %v1715_v56 = vld [vmem:[#allocation14 + $0x18] sm:$0xff]  }
  0xe5   :  { %v1731_v9 = vld [vmem:[#allocation14 + $0x38] sm:$0xff]  }
  0xe7   :  { %1499 = vmatpush3.bf16.msra.mxu0 %v1688_v57  ;;  %1521 = vmatpush3.bf16.msra.mxu1 %v1708_v10  ;;  %v1717_v57 = vld [vmem:[#allocation14 + $0x60] sm:$0xff]  }
  0xe8   :  { %1500 = vmatprep.subr.bf16.mxu0 %v1689_v58  ;;  %1522 = vmatprep.subr.bf16.mxu1 %v1710_v11  ;;  %v1719_v58 = vld [vmem:[#allocation14 + $0x20] sm:$0xff]  }
  0xeb   :  { %1501 = vmatpush3.bf16.msra.mxu0 %v1690_v59  ;;  %1523 = vmatpush3.bf16.msra.mxu1 %v1712_v12  ;;  %v1721_v59 = vld [vmem:[#allocation14 + $0x68] sm:$0xff]  }
  0xec   :  { %1502 = vmatprep.subr.bf16.mxu0 %v1691_v60  ;;  %1524 = vmatprep.subr.bf16.mxu1 %v1714_v13  ;;  %v1723_v60 = vld [vmem:[#allocation14 + $0x28] sm:$0xff]  }
  0xef   :  { %1503 = vmatpush3.bf16.msra.mxu0 %v1692_v61  ;;  %1525 = vmatpush3.bf16.msra.mxu1 %v1716_v14  ;;  %v1725_v61 = vld [vmem:[#allocation14 + $0x70] sm:$0xff]  }
  0xf0   :  { %1504 = vmatprep.subr.bf16.mxu0 %v1693_v62  ;;  %1526 = vmatprep.subr.bf16.mxu1 %v1718_v15  ;;  %v1727_v62 = vld [vmem:[#allocation14 + $0x30] sm:$0xff]  }
  0xf3   :  { %1505 = vmatpush3.bf16.msra.mxu0 %v1694_v63  ;;  %1527 = vmatpush3.bf16.msra.mxu1 %v1720_v16  ;;  %v1385_v63 = vld [vmem:[%s2242_s8] ss:$0 sm:$0xff] }
  0xf4   :  { %1506 = vmatprep.subr.bf16.mxu0 %v1695_v0  ;;  %1528 = vmatprep.subr.bf16.mxu1 %v1722_v17  ;;  %v1729_v0 = vld [vmem:[#allocation14 + $0x78] sm:$0xff]   ;;  %v1733_v17 = vld [vmem:[#allocation3] ss:$12 sps:$4 sm:$0xff]  }
  0xf7   :  { %1507 = vmatpush3.bf16.msra.mxu0 %v1696_v1  ;;  %1529 = vmatpush3.bf16.msra.mxu1 %v1724_v18 }
  0xf8   :  { %1508 = vmatprep.subr.bf16.mxu0 %v1697_v2  ;;  %1530 = vmatprep.subr.bf16.mxu1 %v1726_v19 }
  0xfb   :  { %1509 = vmatpush3.bf16.msra.mxu0 %v1698_v3  ;;  %1531 = vmatpush3.bf16.msra.mxu1 %v1728_v20  ;;  %v1366_v3 = vld [vmem:[%s2240_s6] ss:$0 sm:$0xff] }
  0xfc   :  { %1510 = vmatprep.subr.bf16.mxu0 %v1699_v4  ;;  %1532 = vmatprep.subr.bf16.mxu1 %v1730_v21 }
  0xff   :  { %1511 = vmatpush3.bf16.msra.mxu0 %v1700_v5  ;;  %1533 = vmatpush3.bf16.msra.mxu1 %v1732_v22 }
 0x100   :  { %1540 = vmatprep.subr.bf16.mxu0 %v1701_v6 }
 0x136   :  { %v174_v23 = vpop.xlane.xlu1 %173  ;;  %v182_v24 = vpop.xlane.xlu0 %181 }
 0x137   :  { %v177_v26 = vmax.f32 %v174_v23, 1e-05  ;;  %v185_v28 = vmax.f32 %v182_v24, 1e-05 }
 0x139   :  { %1736 = vrcp.f32 %v177_v26 }
 0x13a   :  { %v176_v25 = vpop.xlane.xlu1 %175  ;;  %v184_v27 = vpop.xlane.xlu0 %183  ;;  %1738 = vrcp.f32 %v185_v28 }
 0x13b   :  { %v178_v29 = vmax.f32 %v176_v25, 1e-05  ;;  %v186_v30 = vmax.f32 %v184_v27, 1e-05 }
 0x13d   :  { %1740 = vrcp.f32 %v178_v29 }
 0x13e   :  { %1742 = vrcp.f32 %v186_v30 }
 0x143   :  { %v1737_v31 = vpop.eup %1736 }
 0x144   :  { %v1739_v32 = vpop.eup %1738 }
 0x147   :  { %v1741_v33 = vpop.eup %1740 }
 0x148   :  { %v1743_v35 = vpop.eup %1742 }
 0x195   :  { %v291_v34 = vpop.f32.mrb[0].mxu0  ;;  %v402_v37 = vpop.f32.mrb[0].mxu1 }
 0x196   :  { %v410_v36 = vmul.f32 %v1737_v31, %v291_v34  ;;  %v1580_v38 = vpop.f32.mrb[1].mxu0  ;;  %v416_v39 = vmul.f32 %v1739_v32, %v402_v37  ;;  %v1600_v40 = vpop.f32.mrb[1].mxu1 }
 0x197   :  { %v294_v41 = vpop.f32.mrb[2].mxu0  ;;  %v405_v43 = vpop.f32.mrb[2].mxu1 }
 0x198   :  { %v412_v42 = vmul.f32 %v1741_v33, %v294_v41  ;;  %v1581_v44 = vpop.f32.mrb[3].mxu0  ;;  %v418_v45 = vmul.f32 %v1743_v35, %v405_v43  ;;  %v1601_v46 = vpop.f32.mrb[3].mxu1  ;;  %v1445_v43 = vld [vmem:[%s2245_s11] ss:$0 sm:$0xff] }
 0x19a   :  { %v413_v47 = vpack.c.bf16 %v412_v42, %v410_v36  ;;  %v419_v48 = vpack.c.bf16 %v418_v45, %v416_v39 }
 0x19c   :  { %1063 = vmatprep.mubr.bf16.mxu0 %v419_v48 }
 0x19d   :  { %1064 = vmatmul.mubr.bf16.vlgmr.msra.gmra.mrb[8].mxu0 %v413_v47 }
 0x19e   :  { %1541 = vmatpush3.bf16.msra.mxu0 %v1703_v49  ;;  %1251 = vmatprep.mubr.bf16.mxu0 %v1735_v50 }
 0x19f   :  { %1542 = vmatprep.subr.bf16.mxu0 %v1705_v51 }
 0x1a2   :  { %1543 = vmatpush3.bf16.msra.mxu0 %v1707_v52 }
 0x1a3   :  { %1544 = vmatprep.subr.bf16.mxu0 %v1709_v53 }
 0x1a6   :  { %1545 = vmatpush3.bf16.msra.mxu0 %v1711_v54 }
 0x1a7   :  { %1546 = vmatprep.subr.bf16.mxu0 %v1713_v55 }
 0x1aa   :  { %1547 = vmatpush3.bf16.msra.mxu0 %v1715_v56 }
 0x1ab   :  { %1548 = vmatprep.subr.bf16.mxu0 %v1717_v57 }
 0x1ae   :  { %1549 = vmatpush3.bf16.msra.mxu0 %v1719_v58 }
 0x1af   :  { %1550 = vmatprep.subr.bf16.mxu0 %v1721_v59 }
 0x1b2   :  { %1551 = vmatpush3.bf16.msra.mxu0 %v1723_v60 }
 0x1b3   :  { %1552 = vmatprep.subr.bf16.mxu0 %v1725_v61 }
 0x1b5   :  { %v1481_v1 = vpop.f32.mrb[4].mxu0  ;;  %v726_v2 = vpop.f32.mrb[4].mxu1 }
 0x1b6   :  { %v1482_v4 = vpop.f32.mrb[5].mxu0  ;;  %v727_v5 = vadd.f32 %v1385_v63, %v726_v2  ;;  %v1620_v7 = vpop.f32.mrb[5].mxu1  ;;  %1553 = vmatpush3.bf16.msra.mxu0 %v1727_v62 }
 0x1b7   :  { %v1483_v6 = vadd.f32 %v1482_v4, %v1481_v1  ;;  %v1484_v8 = vpop.f32.mrb[6].mxu0  ;;  %v729_v10 = vpop.f32.mrb[6].mxu1  ;;  %1554 = vmatprep.subr.bf16.mxu0 %v1729_v0 }
 0x1b8   :  { %v1485_v11 = vpop.f32.mrb[7].mxu0  ;;  %v733_v12 = vmax.f32 %v727_v5, 0.0  ;;  %v730_v14 = vadd.f32 %v1385_v63, %v729_v10  ;;  %v1621_v16 = vpop.f32.mrb[7].mxu1 }
 0x1b9   :  { %v603_v13 = vadd.f32 %v1483_v6, %v1366_v3  ;;  %v1486_v15 = vadd.f32 %v1485_v11, %v1484_v8 }
 0x1ba   :  { %v734_v18 = vmax.f32 %v730_v14, 0.0  ;;  %1555 = vmatpush3.bf16.msra.mxu0 %v1731_v9 }
 0x1bb   :  { %v606_v19 = vadd.f32 %v1486_v15, %v1366_v3  ;;  %v609_v20 = vmax.f32 %v603_v13, 0.0 }
 0x1bc   :  { %v735_v21 = vpack.c.bf16 %v734_v18, %v733_v12 }
 0x1bd   :  { %v610_v22 = vmax.f32 %v606_v19, 0.0  ;;  %1252 = vmatmul.mubr.bf16.vlgmr.msra.gmra.mrb[12].mxu0 %v1733_v17 }
 0x1be   :  { %1104 = vmatprep.mubr.bf16.mxu1 %v735_v21 }
 0x1bf   :  { %v611_v23 = vpack.c.bf16 %v610_v22, %v609_v20 }
 0x1c1   :  { %1105 = vmatmul.mubr.bf16.vlgmr.msra.gmra.mrb[8].mxu1 %v611_v23 }
 0x270   :  { %v1512_v24 = vpop.f32.mrb[8].mxu0 }
 0x271   :  { %v1513_v25 = vpop.f32.mrb[9].mxu0 }
 0x272   :  { %v1514_v26 = vadd.f32 %v1513_v25, %v1512_v24  ;;  %v1515_v27 = vpop.f32.mrb[10].mxu0 }
 0x273   :  { %v1516_v28 = vpop.f32.mrb[11].mxu0 }
 0x274   :  { %v1517_v29 = vadd.f32 %v1516_v28, %v1515_v27 }
 0x290   :  { %v1556_v30 = vpop.f32.mrb[12].mxu0 }
 0x291   :  { %v1557_v31 = vpop.f32.mrb[13].mxu0 }
 0x292   :  { %v1558_v32 = vadd.f32 %v1557_v31, %v1556_v30  ;;  %v1559_v33 = vpop.f32.mrb[14].mxu0  ;;  %v1446_v30 = vld [vmem:[%s2246_s12] ss:$0 sm:$0xff] }
 0x293   :  { %v1560_v35 = vpop.f32.mrb[15].mxu0 }
 0x294   :  { %v1534_v34 = vpop.f32.mrb[8].mxu1  ;;  %v1561_v37 = vadd.f32 %v1560_v35, %v1559_v33 }
 0x295   :  { %v1535_v36 = vpop.f32.mrb[9].mxu1 }
 0x296   :  { %v1536_v38 = vadd.f32 %v1535_v36, %v1534_v34  ;;  %v1537_v39 = vpop.f32.mrb[10].mxu1 }
 0x297   :  { %v1538_v40 = vpop.f32.mrb[11].mxu1 }
 0x298   :  { %v1107_v41 = vadd.f32 %v1536_v38, %v1514_v26  ;;  %v1539_v42 = vadd.f32 %v1538_v40, %v1537_v39 }
 0x29a   :  { %v1254_v44 = vadd.f32 %v1558_v32, %v1107_v41  ;;  %v1110_v45 = vadd.f32 %v1539_v42, %v1517_v29 }
 0x29c   :  { %v1267_v46 = vadd.f32 %v1445_v43, %v1254_v44  ;;  %v1257_v47 = vadd.f32 %v1561_v37, %v1110_v45 }
 0x29e   :  { %v1271_v48 = vmul.f32 0.70710677, %v1267_v46  ;;  %v1268_v49 = vadd.f32 %v1445_v43, %v1257_v47  ;;  %v1269_v27 = vmul.f32 0.5, %v1267_v46 }
 0x2a0   :  { %v1273_v50 = vand.u32 2147483647, %v1271_v48  ;;  %v1272_v51 = vmul.f32 0.70710677, %v1268_v49  ;;  %vm1313_vm1 = vcmp.ge.f32.partialorder %v1271_v48, 0.0  ;;  %v1270_v33 = vmul.f32 0.5, %v1268_v49 }
 0x2a2   :  { %v1275_v52 = vmul.f32 0.3275911, %v1273_v50  ;;  %v1274_v53 = vand.u32 2147483647, %v1272_v51  ;;  %v1301_v57 = vsub.f32 0.0, %v1273_v50  ;;  %vm1314_vm2 = vcmp.ge.f32.partialorder %v1272_v51, 0.0 }
 0x2a4   :  { %v1277_v54 = vadd.f32 1.0, %v1275_v52  ;;  %v1276_v55 = vmul.f32 0.3275911, %v1274_v53  ;;  %v1302_v58 = vsub.f32 0.0, %v1274_v53  ;;  %v1303_v60 = vmul.f32 %v1301_v57, %v1273_v50 }
 0x2a6   :  { %1744 = vrcp.f32 %v1277_v54  ;;  %v1278_v56 = vadd.f32 1.0, %v1276_v55  ;;  %v1304_v63 = vmul.f32 %v1302_v58, %v1274_v53  ;;  %v1305_v1 = vmul.f32 1.442695, %v1303_v60 }
 0x2a8   :  { %1746 = vrcp.f32 %v1278_v56  ;;  %v1307_v5 = vmul.f32 1.442695, %v1304_v63 }
 0x2a9   :  { %1748 = vpow2.f32 %v1305_v1 }
 0x2aa   :  { %1750 = vpow2.f32 %v1307_v5 }
 0x2b0   :  { %v1745_v59 = vpop.eup %1744 }
 0x2b1   :  { %v1283_v61 = vmul.f32 1.0614054, %v1745_v59 }
 0x2b2   :  { %v1747_v62 = vpop.eup %1746 }
 0x2b3   :  { %v1285_v0 = vadd.f32 -1.4531521, %v1283_v61  ;;  %v1284_v2 = vmul.f32 1.0614054, %v1747_v62  ;;  %v1749_v17 = vpop.eup %1748 }
 0x2b4   :  { %v1751_v21 = vpop.eup %1750 }
 0x2b5   :  { %v1287_v3 = vmul.f32 %v1745_v59, %v1285_v0  ;;  %v1286_v4 = vadd.f32 -1.4531521, %v1284_v2 }
 0x2b7   :  { %v1289_v6 = vadd.f32 1.4214138, %v1287_v3  ;;  %v1288_v7 = vmul.f32 %v1747_v62, %v1286_v4 }
 0x2b9   :  { %v1291_v8 = vmul.f32 %v1745_v59, %v1289_v6  ;;  %v1290_v9 = vadd.f32 1.4214138, %v1288_v7 }
 0x2bb   :  { %v1293_v10 = vadd.f32 -0.28449672, %v1291_v8  ;;  %v1292_v11 = vmul.f32 %v1747_v62, %v1290_v9 }
 0x2bd   :  { %v1295_v12 = vmul.f32 %v1745_v59, %v1293_v10  ;;  %v1294_v13 = vadd.f32 -0.28449672, %v1292_v11 }
 0x2bf   :  { %v1297_v14 = vadd.f32 0.2548296, %v1295_v12  ;;  %v1296_v15 = vmul.f32 %v1747_v62, %v1294_v13 }
 0x2c1   :  { %v1299_v16 = vmul.f32 %v1745_v59, %v1297_v14  ;;  %v1298_v18 = vadd.f32 0.2548296, %v1296_v15 }
 0x2c3   :  { %v1309_v19 = vmul.f32 %v1749_v17, %v1299_v16  ;;  %v1300_v20 = vmul.f32 %v1747_v62, %v1298_v18 }
 0x2c5   :  { %v1311_v22 = vsub.f32 1.0, %v1309_v19  ;;  %v1310_v23 = vmul.f32 %v1751_v21, %v1300_v20 }
 0x2c7   :  { %v1315_v24 = vsub.f32 0.0, %v1311_v22  ;;  %v1312_v25 = vsub.f32 1.0, %v1310_v23 }
 0x2c9   :  { %v1317_v26 = vsel %vm1313_vm1, %v1311_v22, %v1315_v24  ;;  %v1316_v29 = vsub.f32 0.0, %v1312_v25 }
 0x2ca   :  { %v1319_v28 = vadd.f32 1.0, %v1317_v26 }
 0x2cb   :  { %v1318_v32 = vsel %vm1314_vm2, %v1312_v25, %v1316_v29 }
 0x2cc   :  { %v1321_v31 = vmul.f32 %v1319_v28, %v1269_v27  ;;  %v1320_v34 = vadd.f32 1.0, %v1318_v32 }
 0x2ce   :  { %v1330_v35 = vmul.f32 %v1446_v30, %v1321_v31  ;;  %v1322_v36 = vmul.f32 %v1320_v34, %v1270_v33 }
 0x2d0   :  { %1332 = vadd.xlane.f32.xlu0 %v1330_v35  ;;  %v1331_v37 = vmul.f32 %v1446_v30, %v1322_v36 }
 0x2d2   :  { %1334 = vadd.xlane.f32.xlu1 %v1331_v37 }
 0x35d   :  { %v1333_v38 = vpop.xlane.xlu0 %1332 }
 0x35e   :  { %1337 = vst.msk [vmem:[%s2247_s13] sm:$0xff] %vm1336_vm3, %v1333_v38 }
 0x35f   :  { %v1335_v39 = vpop.xlane.xlu1 %1334 }
 0x360   :  { %1338 = vst.msk [vmem:[%s2247_s13 + $0x8] sm:$0xff] %vm1336_vm3, %v1335_v39 }
 0x361   :  { %1343 = vsyncpa [#allocation4], 1 }
 0x362   :  { %1344 = vsyncpa [#allocation6], 1 }
 0x363   :  { %1345 = vsyncpa [#allocation9], 1 }
 0x364   :  { %1346 = vsyncpa [#allocation12], 1 }
 0x365   :  { %1347 = vsyncpa [#allocation15], 1 }

// kernel: tpu_custom_call.1
= control target key start
LH: loop header
LB: loop body
LE: loop exit
PB: predicated region body
PF: predicated region fallthrough
CT: control target
= control target key end

     0   :  { %18 = vsyncpa [#allocation4], 0  ;;  %s2234_s0 = inlined_call_operand.hbm [shape: bf16[16,384], index: 0, kind: input, shape index: {}]   ;;  %s2235_s1 = inlined_call_operand.hbm [shape: bf16[16,256], index: 1, kind: input, shape index: {}]   ;;  %s2236_s2 = inlined_call_operand.hbm [shape: bf16[16,256], index: 2, kind: input, shape index: {}]   ;;  %s2237_s3 = inlined_call_operand.hbm [shape: bf16[128,128], index: 3, kind: input, shape index: {}]   ;;  %s2238_s4 = inlined_call_operand.hbm [shape: bf16[128,128], index: 4, kind: input, shape index: {}]   ;;  %s2239_s5 = inlined_call_operand.hbm [shape: bf16[256,128], index: 5, kind: input, shape index: {}]   ;;  %s2240_s6 = inlined_call_operand.vmem [shape: f32[1,128], index: 6, kind: input, shape index: {}]   ;;  %s2241_s7 = inlined_call_operand.hbm [shape: bf16[128,128], index: 7, kind: input, shape index: {}]   ;;  %s2242_s8 = inlined_call_operand.vmem [shape: f32[1,128], index: 8, kind: input, shape index: {}]   ;;  %s2243_s9 = inlined_call_operand.hbm [shape: bf16[256,128], index: 9, kind: input, shape index: {}]   ;;  %s2244_s10 = inlined_call_operand.hbm [shape: bf16[512,128], index: 10, kind: input, shape index: {}]   ;;  %s2245_s11 = inlined_call_operand.vmem [shape: f32[1,128], index: 11, kind: input, shape index: {}]   ;;  %s2246_s12 = inlined_call_operand.vmem [shape: f32[1,128], index: 12, kind: input, shape index: {}]   ;;  %s2247_s13 = inlined_call_operand.vmem [shape: f32[16,1], index: 13, kind: output, shape index: {}]  }
   0x1   :  { %19 = vsyncpa [#allocation6], 0 }
   0x2   :  { %20 = vsyncpa [#allocation9], 0 }
   0x3   :  { %21 = vsyncpa [#allocation12], 0 }
   0x4   :  { %22 = vsyncpa [#allocation15], 0  ;;  %s1960_s25 = smov [#allocation5]   ;;  %s1752_s29 = scalar_lea.hbm %s2235_s1, 256 }
   0x5   :  { %s40_s26 = sshll.u32 %s1960_s25, 4  ;;  %p1753_p0 = scmp.ne.s32.totalorder %s2235_s1, %s1752_s29  ;;  %s41_s26 = int_to_ptr.vmem [resolvable:$true] %s40_s26 }
   0x6   :  { %p1756_p1 = scmp.lt.u32.totalorder %s1752_s29, %s2235_s1 }
   0x8   :  { %p1758_p2 = pnand %p1756_p1, %p1753_p0 }
   0xa   :  { %1761 = shalt.err (!%p1758_p2)
}
   0xb   :  { %s1762_s17 = scalar_lea.vmem %s41_s26, 256  ;;  %p1767_p4 = scmp.lt.s32.totalorder %s41_s26, %s41_s26 }
   0xc   :  { %p1763_p3 = scmp.ne.s32.totalorder %s41_s26, %s1762_s17  ;;  %p1768_p5 = scmp.lt.s32.totalorder %s1762_s17, %s1762_s17 }
   0xe   :  { %p1769_p6 = por %p1768_p5, %p1767_p4 }
  0x10   :  { %p1770_p7 = pnand %p1769_p6, %p1763_p3 }
  0x12   :  { %1773 = shalt.err (!%p1770_p7)
}
  0x13   :  { %s1961_s18 = smov 128   ;;  %s1962_s19 = smov 8  }
  0x14   :  { %46 = dma.hbm_to_vmem [thread:$0]  %s2235_s1, 256, %s41_s26, [#allocation6], %s1961_s18, %s1961_s18, %s1962_s19  }
  0x15   :  { %s1963_s22 = smov [#allocation8]   ;;  %s1774_s27 = scalar_lea.hbm %s2237_s3, 1024 }
  0x16   :  { %s64_s23 = sshll.u32 %s1963_s22, 4  ;;  %p1775_p8 = scmp.ne.s32.totalorder %s2237_s3, %s1774_s27  ;;  %s65_s23 = int_to_ptr.vmem [resolvable:$true] %s64_s23 }
  0x17   :  { %p1778_p9 = scmp.lt.u32.totalorder %s1774_s27, %s2237_s3 }
  0x19   :  { %p1780_p10 = pnand %p1778_p9, %p1775_p8 }
  0x1b   :  { %1783 = shalt.err (!%p1780_p10)
}
  0x1c   :  { %s1784_s15 = scalar_lea.vmem %s65_s23, 1024  ;;  %p1789_p12 = scmp.lt.s32.totalorder %s65_s23, %s65_s23 }
  0x1d   :  { %p1785_p11 = scmp.ne.s32.totalorder %s65_s23, %s1784_s15  ;;  %p1790_p13 = scmp.lt.s32.totalorder %s1784_s15, %s1784_s15 }
  0x1f   :  { %p1791_p0 = por %p1790_p13, %p1789_p12 }
  0x21   :  { %p1792_p1 = pnand %p1791_p0, %p1785_p11 }
  0x23   :  { %1795 = shalt.err (!%p1792_p1)
}
  0x24   :  { %s1964_s1 = smov 64   ;;  %s1965_s26 = smov 4  }
  0x25   :  { %70 = dma.hbm_to_vmem [thread:$0]  %s2237_s3, 1024, %s65_s23, [#allocation9], %s1964_s1, %s1964_s1, %s1965_s26  }
  0x26   :  { %s1966_s20 = smov [#allocation11]   ;;  %s1967_s22 = smov [#allocation14]  }
  0x27   :  { %s88_s21 = sshll.u32 %s1966_s20, 4  ;;  %s116_s24 = sshll.u32 %s1967_s22, 4  ;;  %s89_s21 = int_to_ptr.vmem [resolvable:$true] %s88_s21  ;;  %s2077_s24 = int_to_ptr.vmem [resolvable:$true] %s116_s24 }
  0x28   :  { %s1796_s28 = scalar_lea.hbm %s2239_s5, 2048 }
  0x29   :  { %p1797_p2 = scmp.ne.s32.totalorder %s2239_s5, %s1796_s28  ;;  %p1800_p3 = scmp.lt.u32.totalorder %s1796_s28, %s2239_s5 }
  0x2b   :  { %p1802_p4 = pnand %p1800_p3, %p1797_p2 }
  0x2d   :  { %1805 = shalt.err (!%p1802_p4)
}
  0x2e   :  { %s1806_s3 = scalar_lea.vmem %s89_s21, 2048  ;;  %p1811_p6 = scmp.lt.s32.totalorder %s89_s21, %s89_s21 }
  0x2f   :  { %p1807_p5 = scmp.ne.s32.totalorder %s89_s21, %s1806_s3  ;;  %p1812_p7 = scmp.lt.s32.totalorder %s1806_s3, %s1806_s3 }
  0x31   :  { %p1813_p8 = por %p1812_p7, %p1811_p6 }
  0x33   :  { %p1814_p9 = pnand %p1813_p8, %p1807_p5 }
  0x35   :  { %1817 = shalt.err (!%p1814_p9)
}
  0x36   :  { %94 = dma.hbm_to_vmem [thread:$0]  %s2239_s5, 2048, %s89_s21, [#allocation12], %s1964_s1, %s1964_s1, %s1965_s26  }
  0x37   :  { %s1818_s22 = scalar_lea.hbm %s2243_s9, 2048 }
  0x38   :  { %p1819_p10 = scmp.ne.s32.totalorder %s2243_s9, %s1818_s22  ;;  %p1822_p11 = scmp.lt.u32.totalorder %s1818_s22, %s2243_s9 }
  0x3a   :  { %p1824_p12 = pnand %p1822_p11, %p1819_p10 }
  0x3c   :  { %1827 = shalt.err (!%p1824_p12)
}
  0x3d   :  { %s1828_s30 = scalar_lea.vmem %s2077_s24, 2048  ;;  %p1833_p0 = scmp.lt.s32.totalorder %s2077_s24, %s2077_s24 }
  0x3e   :  { %p1829_p13 = scmp.ne.s32.totalorder %s2077_s24, %s1828_s30  ;;  %p1834_p1 = scmp.lt.s32.totalorder %s1828_s30, %s1828_s30 }
  0x40   :  { %p1835_p2 = por %p1834_p1, %p1833_p0 }
  0x42   :  { %p1836_p3 = pnand %p1835_p2, %p1829_p13 }
  0x44   :  { %1839 = shalt.err (!%p1836_p3)
}
  0x45   :  { %122 = dma.hbm_to_vmem [thread:$0]  %s2243_s9, 2048, %s2077_s24, [#allocation15], %s1964_s1, %s1964_s1, %s1965_s26  }
  0x46   :  { %s1968_s14 = smov [#allocation3]   ;;  %s1840_s16 = scalar_lea.hbm %s2234_s0, 384 }
  0x47   :  { %s28_s15 = sshll.u32 %s1968_s14, 4  ;;  %p1841_p4 = scmp.ne.s32.totalorder %s2234_s0, %s1840_s16  ;;  %s29_s15 = int_to_ptr.vmem [resolvable:$true] %s28_s15 }
  0x48   :  { %p1844_p5 = scmp.lt.u32.totalorder %s1840_s16, %s2234_s0 }
  0x4a   :  { %p1846_p6 = pnand %p1844_p5, %p1841_p4 }
  0x4c   :  { %1849 = shalt.err (!%p1846_p6)
}
  0x4d   :  { %s1850_s27 = scalar_lea.vmem %s29_s15, 384  ;;  %p1855_p8 = scmp.lt.s32.totalorder %s29_s15, %s29_s15 }
  0x4e   :  { %p1851_p7 = scmp.ne.s32.totalorder %s29_s15, %s1850_s27  ;;  %p1856_p9 = scmp.lt.s32.totalorder %s1850_s27, %s1850_s27 }
  0x50   :  { %p1857_p10 = por %p1856_p9, %p1855_p8 }
  0x52   :  { %p1858_p11 = pnand %p1857_p10, %p1851_p7 }
  0x54   :  { %1861 = shalt.err (!%p1858_p11)
}
  0x55   :  { %s1969_s9 = smov 192   ;;  %s1970_s24 = smov 12  }
  0x56   :  { %34 = dma.hbm_to_vmem [thread:$0]  %s2234_s0, 384, %s29_s15, [#allocation4], %s1969_s9, %s1969_s9, %s1970_s24  }
  0x57   :  { %s1971_s30 = smov [#allocation7]   ;;  %s1972_s21 = smov [#allocation10]  }
  0x58   :  { %s52_s5 = sshll.u32 %s1971_s30, 4  ;;  %s76_s14 = sshll.u32 %s1972_s21, 4  ;;  %s53_s5 = int_to_ptr.vmem [resolvable:$true] %s52_s5  ;;  %s77_s14 = int_to_ptr.vmem [resolvable:$true] %s76_s14 }
  0x59   :  { %s1862_s16 = scalar_lea.hbm %s2236_s2, 256 }
  0x5a   :  { %p1863_p12 = scmp.ne.s32.totalorder %s2236_s2, %s1862_s16  ;;  %p1866_p13 = scmp.lt.u32.totalorder %s1862_s16, %s2236_s2 }
  0x5c   :  { %p1868_p0 = pnand %p1866_p13, %p1863_p12 }
  0x5e   :  { %1871 = shalt.err (!%p1868_p0)
}
  0x5f   :  { %s1872_s0 = scalar_lea.vmem %s53_s5, 256  ;;  %p1877_p2 = scmp.lt.s32.totalorder %s53_s5, %s53_s5 }
  0x60   :  { %p1873_p1 = scmp.ne.s32.totalorder %s53_s5, %s1872_s0  ;;  %p1878_p3 = scmp.lt.s32.totalorder %s1872_s0, %s1872_s0 }
  0x62   :  { %p1879_p4 = por %p1878_p3, %p1877_p2 }
  0x64   :  { %p1880_p5 = pnand %p1879_p4, %p1873_p1 }
  0x66   :  { %1883 = shalt.err (!%p1880_p5)
}
  0x67   :  { %58 = dma.hbm_to_vmem [thread:$0]  %s2236_s2, 256, %s53_s5, [#allocation6], %s1961_s18, %s1961_s18, %s1962_s19  }
  0x68   :  { %s1884_s28 = scalar_lea.hbm %s2238_s4, 1024 }
  0x69   :  { %p1885_p6 = scmp.ne.s32.totalorder %s2238_s4, %s1884_s28  ;;  %p1888_p7 = scmp.lt.u32.totalorder %s1884_s28, %s2238_s4 }
  0x6b   :  { %p1890_p8 = pnand %p1888_p7, %p1885_p6 }
  0x6d   :  { %1893 = shalt.err (!%p1890_p8)
}
  0x6e   :  { %s1894_s23 = scalar_lea.vmem %s77_s14, 1024  ;;  %p1899_p10 = scmp.lt.s32.totalorder %s77_s14, %s77_s14 }
  0x6f   :  { %p1895_p9 = scmp.ne.s32.totalorder %s77_s14, %s1894_s23  ;;  %p1900_p11 = scmp.lt.s32.totalorder %s1894_s23, %s1894_s23 }
  0x71   :  { %p1901_p12 = por %p1900_p11, %p1899_p10 }
  0x73   :  { %p1902_p13 = pnand %p1901_p12, %p1895_p9 }
  0x75   :  { %1905 = shalt.err (!%p1902_p13)
}
  0x76   :  { %82 = dma.hbm_to_vmem [thread:$0]  %s2238_s4, 1024, %s77_s14, [#allocation9], %s1964_s1, %s1964_s1, %s1965_s26  }
  0x77   :  { %s1973_s19 = smov [#allocation13]   ;;  %s1974_s16 = smov [#allocation16]  }
  0x78   :  { %s102_s5 = sshll.u32 %s1973_s19, 4  ;;  %s128_s17 = sshll.u32 %s1974_s16, 4  ;;  %s103_s5 = int_to_ptr.vmem [resolvable:$true] %s102_s5  ;;  %s129_s17 = int_to_ptr.vmem [resolvable:$true] %s128_s17 }
  0x79   :  { %s1906_s25 = scalar_lea.hbm %s2241_s7, 1024 }
  0x7a   :  { %p1907_p0 = scmp.ne.s32.totalorder %s2241_s7, %s1906_s25  ;;  %p1910_p1 = scmp.lt.u32.totalorder %s1906_s25, %s2241_s7 }
  0x7c   :  { %p1912_p2 = pnand %p1910_p1, %p1907_p0 }
  0x7e   :  { %1915 = shalt.err (!%p1912_p2)
}
  0x7f   :  { %s1916_s4 = scalar_lea.vmem %s103_s5, 1024  ;;  %p1921_p4 = scmp.lt.s32.totalorder %s103_s5, %s103_s5 }
  0x80   :  { %p1917_p3 = scmp.ne.s32.totalorder %s103_s5, %s1916_s4  ;;  %p1922_p5 = scmp.lt.s32.totalorder %s1916_s4, %s1916_s4 }
  0x82   :  { %p1923_p6 = por %p1922_p5, %p1921_p4 }
  0x84   :  { %p1924_p7 = pnand %p1923_p6, %p1917_p3 }
  0x86   :  { %1927 = shalt.err (!%p1924_p7)
}
  0x87   :  { %108 = dma.hbm_to_vmem [thread:$0]  %s2241_s7, 1024, %s103_s5, [#allocation12], %s1964_s1, %s1964_s1, %s1965_s26  }
  0x88   :  { %s1928_s30 = scalar_lea.hbm %s2244_s10, 4096 }
  0x89   :  { %p1929_p8 = scmp.ne.s32.totalorder %s2244_s10, %s1928_s30  ;;  %p1932_p9 = scmp.lt.u32.totalorder %s1928_s30, %s2244_s10 }
  0x8b   :  { %p1934_p10 = pnand %p1932_p9, %p1929_p8 }
  0x8d   :  { %1937 = shalt.err (!%p1934_p10)
}
  0x8e   :  { %s1938_s18 = scalar_lea.vmem %s129_s17, 4096  ;;  %p1943_p12 = scmp.lt.s32.totalorder %s129_s17, %s129_s17 }
  0x8f   :  { %p1939_p11 = scmp.ne.s32.totalorder %s129_s17, %s1938_s18  ;;  %p1944_p13 = scmp.lt.s32.totalorder %s1938_s18, %s1938_s18 }
  0x91   :  { %p1945_p0 = por %p1944_p13, %p1943_p12 }
  0x93   :  { %p1946_p1 = pnand %p1945_p0, %p1939_p11 }
  0x95   :  { %1949 = shalt.err (!%p1946_p1)
}
  0x96   :  { %134 = dma.hbm_to_vmem [thread:$0]  %s2244_s10, 4096, %s129_s17, [#allocation15], %s1964_s1, %s1964_s1, %s1965_s26  }
  0x97   :  { %1950 = dma.done.wait [#allocation4], 384  }
  0x98   :  { %1951 = vsyncadd [#allocation4], 4294966912 }
  0x99   :  { %1952 = dma.done.wait [#allocation6], 512  }
  0x9a   :  { %1953 = vsyncadd [#allocation6], 4294966784 }
  0x9b   :  { %1954 = dma.done.wait [#allocation9], 2048  }
  0x9c   :  { %1955 = vsyncadd [#allocation9], 4294965248 }
  0x9d   :  { %1956 = dma.done.wait [#allocation12], 3072  }
  0x9e   :  { %1957 = vsyncadd [#allocation12], 4294964224 }
  0x9f   :  { %1958 = dma.done.wait [#allocation15], 6144  }
  0xa0   :  { %1959 = vsyncadd [#allocation15], 4294961152  ;;  %v1975_v0 = vmov 0.0   ;;  %vm1976_vm0 = vmmov 0   ;;  %v1639_v1 = vld [vmem:[#allocation8] sm:$0xff]   ;;  %v1641_v3 = vld [vmem:[#allocation8 + $0x8] sm:$0xff]  }
  0xa1   :  { %1562 = vmatprep.subr.bf16.mxu0 %v1975_v0  ;;  %1582 = vmatprep.subr.bf16.mxu1 %v1975_v0  ;;  %v1640_v2 = vld [vmem:[#allocation10] sm:$0xff]   ;;  %v1642_v4 = vld [vmem:[#allocation10 + $0x8] sm:$0xff]   ;;  %v1643_v5 = vld [vmem:[#allocation8 + $0x10] sm:$0xff]   ;;  %vm1336_vm3 = vcmask 7168  }
  0xa2   :  { %1578 = vmatprep.mubr.msk.bf16.mxu0 %vm1976_vm0, %v1975_v0  ;;  %1598 = vmatprep.mubr.msk.bf16.mxu1 %vm1976_vm0, %v1975_v0  ;;  %v1644_v6 = vld [vmem:[#allocation10 + $0x10] sm:$0xff]   ;;  %v1645_v7 = vld [vmem:[#allocation8 + $0x18] sm:$0xff]   ;;  %v1647_v9 = vld [vmem:[#allocation8 + $0x20] sm:$0xff]  }
  0xa3   :  { %1563 = vmatpush3.bf16.msra.mxu0 %v1639_v1  ;;  %1583 = vmatpush3.bf16.msra.mxu1 %v1640_v2  ;;  %v1646_v8 = vld [vmem:[#allocation10 + $0x18] sm:$0xff]   ;;  %v1648_v10 = vld [vmem:[#allocation10 + $0x20] sm:$0xff]   ;;  %v1649_v13 = vld [vmem:[#allocation8 + $0x28] sm:$0xff]  }
  0xa4   :  { %1564 = vmatprep.subr.bf16.mxu0 %v1975_v0  ;;  %1584 = vmatprep.subr.bf16.mxu1 %v1975_v0  ;;  %v167_v11 = vld [vmem:[#allocation5] sm:$0xf]  ;;  %v169_v12 = vld [vmem:[#allocation5 + $0x4] sm:$0xf]  ;;  %v1650_v16 = vld [vmem:[#allocation10 + $0x28] sm:$0xff]  }
  0xa5   :  { %v179_v14 = vunpack.c.l.bf16 %v169_v12  ;;  %v171_v15 = vunpack.c.l.bf16 %v167_v11  ;;  %v170_v17 = vld [vmem:[#allocation5 + $0xc] sm:$0xf]  ;;  %v168_v18 = vld [vmem:[#allocation5 + $0x8] sm:$0xf]  ;;  %v1651_v21 = vld [vmem:[#allocation8 + $0x30] sm:$0xff]  }
  0xa6   :  { %v180_v19 = vunpack.c.l.bf16 %v170_v17  ;;  %v172_v20 = vunpack.c.l.bf16 %v168_v18  ;;  %v1652_v22 = vld [vmem:[#allocation10 + $0x30] sm:$0xff]   ;;  %v1653_v23 = vld [vmem:[#allocation8 + $0x38] sm:$0xff]   ;;  %v1657_v25 = vld [vmem:[#allocation11 + $0x40] sm:$0xff]   ;;  %v1348_v26 = vcombine.low %v167_v11, %v168_v18  ;;  %v1357_v28 = vcombine.low %v169_v12, %v170_v17 }
  0xa7   :  { %1565 = vmatpush3.bf16.msra.mxu0 %v1641_v3  ;;  %1585 = vmatpush3.bf16.msra.mxu1 %v1642_v4  ;;  %v1654_v24 = vld [vmem:[#allocation10 + $0x38] sm:$0xff]   ;;  %v1658_v27 = vld [vmem:[#allocation11] sm:$0xff]   ;;  %v1660_v30 = vld [vmem:[#allocation11 + $0x48] sm:$0xff]  }
  0xa8   :  { %1566 = vmatprep.subr.bf16.mxu0 %v1975_v0  ;;  %1586 = vmatprep.subr.bf16.mxu1 %v1975_v0  ;;  %v1659_v29 = vld [vmem:[#allocation13] sm:$0xff]   ;;  %v1661_v31 = vld [vmem:[#allocation11 + $0x8] sm:$0xff]   ;;  %v1663_v33 = vld [vmem:[#allocation11 + $0x50] sm:$0xff]  }
  0xa9   :  { %181 = vadd.xlane.f32.xlu0 %v179_v14  ;;  %173 = vadd.xlane.f32.xlu1 %v171_v15  ;;  %v1662_v32 = vld [vmem:[#allocation13 + $0x8] sm:$0xff]   ;;  %v1664_v34 = vld [vmem:[#allocation11 + $0x10] sm:$0xff]   ;;  %v1666_v36 = vld [vmem:[#allocation11 + $0x58] sm:$0xff]  }
  0xaa   :  { %v1665_v35 = vld [vmem:[#allocation13 + $0x10] sm:$0xff]   ;;  %v1667_v37 = vld [vmem:[#allocation11 + $0x18] sm:$0xff]   ;;  %v1669_v40 = vld [vmem:[#allocation11 + $0x60] sm:$0xff]  }
  0xab   :  { %1567 = vmatpush3.bf16.msra.mxu0 %v1643_v5  ;;  %1587 = vmatpush3.bf16.msra.mxu1 %v1644_v6  ;;  %v1668_v38 = vld [vmem:[#allocation13 + $0x18] sm:$0xff]   ;;  %v1670_v41 = vld [vmem:[#allocation11 + $0x20] sm:$0xff]   ;;  %v1672_v43 = vld [vmem:[#allocation11 + $0x68] sm:$0xff]  }
  0xac   :  { %1568 = vmatprep.subr.bf16.mxu0 %v1975_v0  ;;  %1588 = vmatprep.subr.bf16.mxu1 %v1975_v0  ;;  %v1683_v39 = vld [vmem:[#allocation7 + $0x4] ss:$8 sps:$4 sm:$0xff]   ;;  %v1671_v42 = vld [vmem:[#allocation13 + $0x20] sm:$0xff]   ;;  %v1673_v44 = vld [vmem:[#allocation11 + $0x28] sm:$0xff]  }
  0xad   :  { %183 = vadd.xlane.f32.xlu0 %v180_v19  ;;  %175 = vadd.xlane.f32.xlu1 %v172_v20  ;;  %v1674_v45 = vld [vmem:[#allocation13 + $0x28] sm:$0xff]   ;;  %v1675_v46 = vld [vmem:[#allocation11 + $0x70] sm:$0xff]   ;;  %v1678_v49 = vld [vmem:[#allocation11 + $0x78] sm:$0xff]  }
  0xae   :  { %v1676_v47 = vld [vmem:[#allocation11 + $0x30] sm:$0xff]   ;;  %v1679_v50 = vld [vmem:[#allocation11 + $0x38] sm:$0xff]   ;;  %v1685_v52 = vld [vmem:[#allocation16 + $0x40] sm:$0xff]  }
  0xaf   :  { %1569 = vmatpush3.bf16.msra.mxu0 %v1645_v7  ;;  %1589 = vmatpush3.bf16.msra.mxu1 %v1646_v8  ;;  %v1677_v48 = vld [vmem:[#allocation13 + $0x30] sm:$0xff]   ;;  %v1680_v51 = vld [vmem:[#allocation13 + $0x38] sm:$0xff]   ;;  %v1686_v55 = vld [vmem:[#allocation16] sm:$0xff]  }
  0xb0   :  { %1570 = vmatprep.subr.bf16.mxu0 %v1975_v0  ;;  %1590 = vmatprep.subr.bf16.mxu1 %v1975_v0  ;;  %v1681_v53 = vld [vmem:[#allocation7] ss:$8 sps:$4 sm:$0xff]   ;;  %v1687_v56 = vld [vmem:[#allocation16 + $0x48] sm:$0xff]   ;;  %v1693_v62 = vld [vmem:[#allocation16 + $0x60] sm:$0xff]  }
  0xb1   :  { %v1684_v54 = vld [vmem:[#allocation3 + $0x8] ss:$12 sps:$4 sm:$0xff]   ;;  %v1688_v57 = vld [vmem:[#allocation16 + $0x8] sm:$0xff]   ;;  %v1694_v63 = vld [vmem:[#allocation16 + $0x20] sm:$0xff]  }
  0xb2   :  { %v1689_v58 = vld [vmem:[#allocation16 + $0x50] sm:$0xff]   ;;  %v1691_v60 = vld [vmem:[#allocation16 + $0x58] sm:$0xff]   ;;  %v1696_v1 = vld [vmem:[#allocation16 + $0x28] sm:$0xff]  }
  0xb3   :  { %1571 = vmatpush3.bf16.msra.mxu0 %v1647_v9  ;;  %1591 = vmatpush3.bf16.msra.mxu1 %v1648_v10  ;;  %v1690_v59 = vld [vmem:[#allocation16 + $0x10] sm:$0xff]   ;;  %v1692_v61 = vld [vmem:[#allocation16 + $0x18] sm:$0xff]   ;;  %v1701_v6 = vld [vmem:[#allocation14 + $0x40] sm:$0xff]  }
  0xb4   :  { %1572 = vmatprep.subr.bf16.mxu0 %v1975_v0  ;;  %1592 = vmatprep.subr.bf16.mxu1 %v1975_v0  ;;  %v1697_v2 = vld [vmem:[#allocation16 + $0x70] sm:$0xff]   ;;  %v1699_v4 = vld [vmem:[#allocation16 + $0x78] sm:$0xff]   ;;  %v1702_v7 = vld [vmem:[#allocation16 + $0xc0] sm:$0xff]  }
  0xb5   :  { %v1698_v3 = vld [vmem:[#allocation16 + $0x30] sm:$0xff]   ;;  %v1700_v5 = vld [vmem:[#allocation16 + $0x38] sm:$0xff]   ;;  %v1704_v8 = vld [vmem:[#allocation16 + $0x80] sm:$0xff]  }
  0xb6   :  { %v1706_v9 = vld [vmem:[#allocation16 + $0xc8] sm:$0xff]   ;;  %v1710_v11 = vld [vmem:[#allocation16 + $0xd0] sm:$0xff]   ;;  %v1716_v14 = vld [vmem:[#allocation16 + $0x98] sm:$0xff]  }
  0xb7   :  { %1573 = vmatpush3.bf16.msra.mxu0 %v1649_v13  ;;  %1593 = vmatpush3.bf16.msra.mxu1 %v1650_v16  ;;  %v1708_v10 = vld [vmem:[#allocation16 + $0x88] sm:$0xff]   ;;  %v1712_v12 = vld [vmem:[#allocation16 + $0x90] sm:$0xff]   ;;  %v1714_v13 = vld [vmem:[#allocation16 + $0xd8] sm:$0xff]  }
  0xb8   :  { %1574 = vmatprep.subr.bf16.mxu0 %v1975_v0  ;;  %1594 = vmatprep.subr.bf16.mxu1 %v1975_v0  ;;  %v1718_v15 = vld [vmem:[#allocation16 + $0xe0] sm:$0xff]   ;;  %v1722_v17 = vld [vmem:[#allocation16 + $0xe8] sm:$0xff]   ;;  %v1726_v19 = vld [vmem:[#allocation16 + $0xf0] sm:$0xff]  }
  0xb9   :  { %v1720_v16 = vld [vmem:[#allocation16 + $0xa0] sm:$0xff]   ;;  %v1724_v18 = vld [vmem:[#allocation16 + $0xa8] sm:$0xff]   ;;  %v1728_v20 = vld [vmem:[#allocation16 + $0xb0] sm:$0xff]  }
  0xbb   :  { %1575 = vmatpush3.bf16.msra.mxu0 %v1651_v21  ;;  %1595 = vmatpush3.bf16.msra.mxu1 %v1652_v22  ;;  %v1730_v21 = vld [vmem:[#allocation16 + $0xf8] sm:$0xff]  }
  0xbc   :  { %1576 = vmatprep.subr.bf16.mxu0 %v1975_v0  ;;  %1596 = vmatprep.subr.bf16.mxu1 %v1975_v0  ;;  %v1732_v22 = vld [vmem:[#allocation16 + $0xb8] sm:$0xff]  }
  0xbf   :  { %1577 = vmatpush3.bf16.msra.mxu0 %v1653_v23  ;;  %1597 = vmatpush3.bf16.msra.mxu1 %v1654_v24 }
  0xc0   :  { %1465 = vmatprep.subr.bf16.mxu0 %v1657_v25  ;;  %1602 = vmatprep.subr.bf16.mxu1 %v1975_v0 }
  0xc2   :  { %1579 = vmatmul.mubr.bf16.vlgmr.msra.gmra.mrb[0].mxu0 %v1348_v26  ;;  %1599 = vmatmul.mubr.bf16.vlgmr.msra.gmra.mrb[0].mxu1 %v1357_v28 }
  0xc3   :  { %1466 = vmatpush3.bf16.msra.mxu0 %v1658_v27  ;;  %1603 = vmatpush3.bf16.msra.mxu1 %v1659_v29 }
  0xc4   :  { %1467 = vmatprep.subr.bf16.mxu0 %v1660_v30  ;;  %1604 = vmatprep.subr.bf16.mxu1 %v1975_v0 }
  0xc5   :  { %1618 = vmatprep.mubr.msk.bf16.mxu1 %vm1976_vm0, %v1975_v0  ;;  %600 = vmatprep.mubr.bf16.mxu0 %v1683_v39 }
  0xc7   :  { %1468 = vmatpush3.bf16.msra.mxu0 %v1661_v31  ;;  %1605 = vmatpush3.bf16.msra.mxu1 %v1662_v32 }
  0xc8   :  { %1469 = vmatprep.subr.bf16.mxu0 %v1663_v33  ;;  %1606 = vmatprep.subr.bf16.mxu1 %v1975_v0 }
  0xcb   :  { %1470 = vmatpush3.bf16.msra.mxu0 %v1664_v34  ;;  %1607 = vmatpush3.bf16.msra.mxu1 %v1665_v35 }
  0xcc   :  { %1471 = vmatprep.subr.bf16.mxu0 %v1666_v36  ;;  %1608 = vmatprep.subr.bf16.mxu1 %v1975_v0 }
  0xcf   :  { %1472 = vmatpush3.bf16.msra.mxu0 %v1667_v37  ;;  %1609 = vmatpush3.bf16.msra.mxu1 %v1668_v38 }
  0xd0   :  { %1473 = vmatprep.subr.bf16.mxu0 %v1669_v40  ;;  %1610 = vmatprep.subr.bf16.mxu1 %v1975_v0 }
  0xd3   :  { %1474 = vmatpush3.bf16.msra.mxu0 %v1670_v41  ;;  %1611 = vmatpush3.bf16.msra.mxu1 %v1671_v42 }
  0xd4   :  { %1475 = vmatprep.subr.bf16.mxu0 %v1672_v43  ;;  %1612 = vmatprep.subr.bf16.mxu1 %v1975_v0 }
  0xd7   :  { %1476 = vmatpush3.bf16.msra.mxu0 %v1673_v44  ;;  %1613 = vmatpush3.bf16.msra.mxu1 %v1674_v45 }
  0xd8   :  { %1477 = vmatprep.subr.bf16.mxu0 %v1675_v46  ;;  %1614 = vmatprep.subr.bf16.mxu1 %v1975_v0 }
  0xdb   :  { %1478 = vmatpush3.bf16.msra.mxu0 %v1676_v47  ;;  %1615 = vmatpush3.bf16.msra.mxu1 %v1677_v48 }
  0xdc   :  { %1479 = vmatprep.subr.bf16.mxu0 %v1678_v49  ;;  %1616 = vmatprep.subr.bf16.mxu1 %v1975_v0  ;;  %v1695_v0 = vld [vmem:[#allocation16 + $0x68] sm:$0xff]   ;;  %v1703_v49 = vld [vmem:[#allocation14] sm:$0xff]  }
  0xdf   :  { %1480 = vmatpush3.bf16.msra.mxu0 %v1679_v50  ;;  %1617 = vmatpush3.bf16.msra.mxu1 %v1680_v51  ;;  %v1735_v50 = vld [vmem:[#allocation3 + $0x4] ss:$12 sps:$4 sm:$0xff]  }
  0xe0   :  { %1496 = vmatprep.subr.bf16.mxu0 %v1685_v52  ;;  %1518 = vmatprep.subr.bf16.mxu1 %v1702_v7  ;;  %v1705_v51 = vld [vmem:[#allocation14 + $0x48] sm:$0xff]  }
  0xe1   :  { %v1707_v52 = vld [vmem:[#allocation14 + $0x8] sm:$0xff]  }
  0xe2   :  { %601 = vmatmul.mubr.bf16.vlgmr.msra.gmra.mrb[4].mxu0 %v1681_v53  ;;  %1619 = vmatmul.mubr.bf16.vlgmr.msra.gmra.mrb[4].mxu1 %v1684_v54  ;;  %v1709_v53 = vld [vmem:[#allocation14 + $0x50] sm:$0xff]  }
  0xe3   :  { %1497 = vmatpush3.bf16.msra.mxu0 %v1686_v55  ;;  %1519 = vmatpush3.bf16.msra.mxu1 %v1704_v8  ;;  %v1711_v54 = vld [vmem:[#allocation14 + $0x10] sm:$0xff]   ;;  %v1713_v55 = vld [vmem:[#allocation14 + $0x58] sm:$0xff]  }
  0xe4   :  { %1498 = vmatprep.subr.bf16.mxu0 %v1687_v56  ;;  %1520 = vmatprep.subr.bf16.mxu1 %v1706_v9  ;;  %v1715_v56 = vld [vmem:[#allocation14 + $0x18] sm:$0xff]  }
  0xe5   :  { %v1731_v9 = vld [vmem:[#allocation14 + $0x38] sm:$0xff]  }
  0xe7   :  { %1499 = vmatpush3.bf16.msra.mxu0 %v1688_v57  ;;  %1521 = vmatpush3.bf16.msra.mxu1 %v1708_v10  ;;  %v1717_v57 = vld [vmem:[#allocation14 + $0x60] sm:$0xff]  }
  0xe8   :  { %1500 = vmatprep.subr.bf16.mxu0 %v1689_v58  ;;  %1522 = vmatprep.subr.bf16.mxu1 %v1710_v11  ;;  %v1719_v58 = vld [vmem:[#allocation14 + $0x20] sm:$0xff]  }
  0xeb   :  { %1501 = vmatpush3.bf16.msra.mxu0 %v1690_v59  ;;  %1523 = vmatpush3.bf16.msra.mxu1 %v1712_v12  ;;  %v1721_v59 = vld [vmem:[#allocation14 + $0x68] sm:$0xff]  }
  0xec   :  { %1502 = vmatprep.subr.bf16.mxu0 %v1691_v60  ;;  %1524 = vmatprep.subr.bf16.mxu1 %v1714_v13  ;;  %v1723_v60 = vld [vmem:[#allocation14 + $0x28] sm:$0xff]  }
  0xef   :  { %1503 = vmatpush3.bf16.msra.mxu0 %v1692_v61  ;;  %1525 = vmatpush3.bf16.msra.mxu1 %v1716_v14  ;;  %v1725_v61 = vld [vmem:[#allocation14 + $0x70] sm:$0xff]  }
  0xf0   :  { %1504 = vmatprep.subr.bf16.mxu0 %v1693_v62  ;;  %1526 = vmatprep.subr.bf16.mxu1 %v1718_v15  ;;  %v1727_v62 = vld [vmem:[#allocation14 + $0x30] sm:$0xff]  }
  0xf3   :  { %1505 = vmatpush3.bf16.msra.mxu0 %v1694_v63  ;;  %1527 = vmatpush3.bf16.msra.mxu1 %v1720_v16  ;;  %v1385_v63 = vld [vmem:[%s2242_s8] ss:$0 sm:$0xff] }
  0xf4   :  { %1506 = vmatprep.subr.bf16.mxu0 %v1695_v0  ;;  %1528 = vmatprep.subr.bf16.mxu1 %v1722_v17  ;;  %v1729_v0 = vld [vmem:[#allocation14 + $0x78] sm:$0xff]   ;;  %v1733_v17 = vld [vmem:[#allocation3] ss:$12 sps:$4 sm:$0xff]  }
  0xf7   :  { %1507 = vmatpush3.bf16.msra.mxu0 %v1696_v1  ;;  %1529 = vmatpush3.bf16.msra.mxu1 %v1724_v18 }
  0xf8   :  { %1508 = vmatprep.subr.bf16.mxu0 %v1697_v2  ;;  %1530 = vmatprep.subr.bf16.mxu1 %v1726_v19 }
  0xfb   :  { %1509 = vmatpush3.bf16.msra.mxu0 %v1698_v3  ;;  %1531 = vmatpush3.bf16.msra.mxu1 %v1728_v20  ;;  %v1366_v3 = vld [vmem:[%s2240_s6] ss:$0 sm:$0xff] }
  0xfc   :  { %1510 = vmatprep.subr.bf16.mxu0 %v1699_v4  ;;  %1532 = vmatprep.subr.bf16.mxu1 %v1730_v21 }
  0xff   :  { %1511 = vmatpush3.bf16.msra.mxu0 %v1700_v5  ;;  %1533 = vmatpush3.bf16.msra.mxu1 %v1732_v22 }
 0x100   :  { %1540 = vmatprep.subr.bf16.mxu0 %v1701_v6 }
 0x136   :  { %v174_v23 = vpop.xlane.xlu1 %173  ;;  %v182_v24 = vpop.xlane.xlu0 %181 }
 0x137   :  { %v177_v26 = vmax.f32 %v174_v23, 1e-05  ;;  %v185_v28 = vmax.f32 %v182_v24, 1e-05 }
 0x139   :  { %1736 = vrcp.f32 %v177_v26 }
 0x13a   :  { %v176_v25 = vpop.xlane.xlu1 %175  ;;  %v184_v27 = vpop.xlane.xlu0 %183  ;;  %1738 = vrcp.f32 %v185_v28 }
 0x13b   :  { %v178_v29 = vmax.f32 %v176_v25, 1e-05  ;;  %v186_v30 = vmax.f32 %v184_v27, 1e-05 }
 0x13d   :  { %1740 = vrcp.f32 %v178_v29 }
 0x13e   :  { %1742 = vrcp.f32 %v186_v30 }
 0x143   :  { %v1737_v31 = vpop.eup %1736 }
 0x144   :  { %v1739_v32 = vpop.eup %1738 }
 0x147   :  { %v1741_v33 = vpop.eup %1740 }
 0x148   :  { %v1743_v35 = vpop.eup %1742 }
 0x195   :  { %v291_v34 = vpop.f32.mrb[0].mxu0  ;;  %v402_v37 = vpop.f32.mrb[0].mxu1 }
 0x196   :  { %v410_v36 = vmul.f32 %v1737_v31, %v291_v34  ;;  %v1580_v38 = vpop.f32.mrb[1].mxu0  ;;  %v416_v39 = vmul.f32 %v1739_v32, %v402_v37  ;;  %v1600_v40 = vpop.f32.mrb[1].mxu1 }
 0x197   :  { %v294_v41 = vpop.f32.mrb[2].mxu0  ;;  %v405_v43 = vpop.f32.mrb[2].mxu1 }
 0x198   :  { %v412_v42 = vmul.f32 %v1741_v33, %v294_v41  ;;  %v1581_v44 = vpop.f32.mrb[3].mxu0  ;;  %v418_v45 = vmul.f32 %v1743_v35, %v405_v43  ;;  %v1601_v46 = vpop.f32.mrb[3].mxu1  ;;  %v1445_v43 = vld [vmem:[%s2245_s11] ss:$0 sm:$0xff] }
 0x19a   :  { %v413_v47 = vpack.c.bf16 %v412_v42, %v410_v36  ;;  %v419_v48 = vpack.c.bf16 %v418_v45, %v416_v39 }
 0x19c   :  { %1063 = vmatprep.mubr.bf16.mxu0 %v419_v48 }
 0x19d   :  { %1064 = vmatmul.mubr.bf16.vlgmr.msra.gmra.mrb[8].mxu0 %v413_v47 }
 0x19e   :  { %1541 = vmatpush3.bf16.msra.mxu0 %v1703_v49  ;;  %1251 = vmatprep.mubr.bf16.mxu0 %v1735_v50 }
 0x19f   :  { %1542 = vmatprep.subr.bf16.mxu0 %v1705_v51 }
 0x1a2   :  { %1543 = vmatpush3.bf16.msra.mxu0 %v1707_v52 }
 0x1a3   :  { %1544 = vmatprep.subr.bf16.mxu0 %v1709_v53 }
 0x1a6   :  { %1545 = vmatpush3.bf16.msra.mxu0 %v1711_v54 }
 0x1a7   :  { %1546 = vmatprep.subr.bf16.mxu0 %v1713_v55 }
 0x1aa   :  { %1547 = vmatpush3.bf16.msra.mxu0 %v1715_v56 }
 0x1ab   :  { %1548 = vmatprep.subr.bf16.mxu0 %v1717_v57 }
 0x1ae   :  { %1549 = vmatpush3.bf16.msra.mxu0 %v1719_v58 }
 0x1af   :  { %1550 = vmatprep.subr.bf16.mxu0 %v1721_v59 }
 0x1b2   :  { %1551 = vmatpush3.bf16.msra.mxu0 %v1723_v60 }
 0x1b3   :  { %1552 = vmatprep.subr.bf16.mxu0 %v1725_v61 }
 0x1b5   :  { %v1481_v1 = vpop.f32.mrb[4].mxu0  ;;  %v726_v2 = vpop.f32.mrb[4].mxu1 }
 0x1b6   :  { %v1482_v4 = vpop.f32.mrb[5].mxu0  ;;  %v727_v5 = vadd.f32 %v1385_v63, %v726_v2  ;;  %v1620_v7 = vpop.f32.mrb[5].mxu1  ;;  %1553 = vmatpush3.bf16.msra.mxu0 %v1727_v62 }
 0x1b7   :  { %v1483_v6 = vadd.f32 %v1482_v4, %v1481_v1  ;;  %v1484_v8 = vpop.f32.mrb[6].mxu0  ;;  %v729_v10 = vpop.f32.mrb[6].mxu1  ;;  %1554 = vmatprep.subr.bf16.mxu0 %v1729_v0 }
 0x1b8   :  { %v1485_v11 = vpop.f32.mrb[7].mxu0  ;;  %v733_v12 = vmax.f32 %v727_v5, 0.0  ;;  %v730_v14 = vadd.f32 %v1385_v63, %v729_v10  ;;  %v1621_v16 = vpop.f32.mrb[7].mxu1 }
 0x1b9   :  { %v603_v13 = vadd.f32 %v1483_v6, %v1366_v3  ;;  %v1486_v15 = vadd.f32 %v1485_v11, %v1484_v8 }
 0x1ba   :  { %v734_v18 = vmax.f32 %v730_v14, 0.0  ;;  %1555 = vmatpush3.bf16.msra.mxu0 %v1731_v9 }
 0x1bb   :  { %v606_v19 = vadd.f32 %v1486_v15, %v1366_v3  ;;  %v609_v20 = vmax.f32 %v603_v13, 0.0 }
 0x1bc   :  { %v735_v21 = vpack.c.bf16 %v734_v18, %v733_v12 }
 0x1bd   :  { %v610_v22 = vmax.f32 %v606_v19, 0.0  ;;  %1252 = vmatmul.mubr.bf16.vlgmr.msra.gmra.mrb[12].mxu0 %v1733_v17 }
 0x1be   :  { %1104 = vmatprep.mubr.bf16.mxu1 %v735_v21 }
 0x1bf   :  { %v611_v23 = vpack.c.bf16 %v610_v22, %v609_v20 }
 0x1c1   :  { %1105 = vmatmul.mubr.bf16.vlgmr.msra.gmra.mrb[8].mxu1 %v611_v23 }
 0x270   :  { %v1512_v24 = vpop.f32.mrb[8].mxu0 }
 0x271   :  { %v1513_v25 = vpop.f32.mrb[9].mxu0 }
 0x272   :  { %v1514_v26 = vadd.f32 %v1513_v25, %v1512_v24  ;;  %v1515_v27 = vpop.f32.mrb[10].mxu0 }
 0x273   :  { %v1516_v28 = vpop.f32.mrb[11].mxu0 }
 0x274   :  { %v1517_v29 = vadd.f32 %v1516_v28, %v1515_v27 }
 0x290   :  { %v1556_v30 = vpop.f32.mrb[12].mxu0 }
 0x291   :  { %v1557_v31 = vpop.f32.mrb[13].mxu0 }
 0x292   :  { %v1558_v32 = vadd.f32 %v1557_v31, %v1556_v30  ;;  %v1559_v33 = vpop.f32.mrb[14].mxu0  ;;  %v1446_v30 = vld [vmem:[%s2246_s12] ss:$0 sm:$0xff] }
 0x293   :  { %v1560_v35 = vpop.f32.mrb[15].mxu0 }
 0x294   :  { %v1534_v34 = vpop.f32.mrb[8].mxu1  ;;  %v1561_v37 = vadd.f32 %v1560_v35, %v1559_v33 }
 0x295   :  { %v1535_v36 = vpop.f32.mrb[9].mxu1 }
 0x296   :  { %v1536_v38 = vadd.f32 %v1535_v36, %v1534_v34  ;;  %v1537_v39 = vpop.f32.mrb[10].mxu1 }
 0x297   :  { %v1538_v40 = vpop.f32.mrb[11].mxu1 }
 0x298   :  { %v1107_v41 = vadd.f32 %v1536_v38, %v1514_v26  ;;  %v1539_v42 = vadd.f32 %v1538_v40, %v1537_v39 }
 0x29a   :  { %v1254_v44 = vadd.f32 %v1558_v32, %v1107_v41  ;;  %v1110_v45 = vadd.f32 %v1539_v42, %v1517_v29 }
 0x29c   :  { %v1267_v46 = vadd.f32 %v1445_v43, %v1254_v44  ;;  %v1257_v47 = vadd.f32 %v1561_v37, %v1110_v45 }
 0x29e   :  { %v1271_v48 = vmul.f32 0.70710677, %v1267_v46  ;;  %v1268_v49 = vadd.f32 %v1445_v43, %v1257_v47  ;;  %v1269_v27 = vmul.f32 0.5, %v1267_v46 }
 0x2a0   :  { %v1273_v50 = vand.u32 2147483647, %v1271_v48  ;;  %v1272_v51 = vmul.f32 0.70710677, %v1268_v49  ;;  %vm1313_vm1 = vcmp.ge.f32.partialorder %v1271_v48, 0.0  ;;  %v1270_v33 = vmul.f32 0.5, %v1268_v49 }
 0x2a2   :  { %v1275_v52 = vmul.f32 0.3275911, %v1273_v50  ;;  %v1274_v53 = vand.u32 2147483647, %v1272_v51  ;;  %v1301_v57 = vsub.f32 0.0, %v1273_v50  ;;  %vm1314_vm2 = vcmp.ge.f32.partialorder %v1272_v51, 0.0 }
 0x2a4   :  { %v1277_v54 = vadd.f32 1.0, %v1275_v52  ;;  %v1276_v55 = vmul.f32 0.3275911, %v1274_v53  ;;  %v1302_v58 = vsub.f32 0.0, %v1274_v53  ;;  %v1303_v60 = vmul.f32 %v1301_v57, %v1273_v50 }
 0x2a6   :  { %1744 = vrcp.f32 %v1277_v54  ;;  %v1278_v56 = vadd.f32 1.0, %v1276_v55  ;;  %v1304_v63 = vmul.f32 %v1302_v58, %v1274_v53  ;;  %v1305_v1 = vmul.f32 1.442695, %v1303_v60 }
 0x2a8   :  { %1746 = vrcp.f32 %v1278_v56  ;;  %v1307_v5 = vmul.f32 1.442695, %v1304_v63 }
 0x2a9   :  { %1748 = vpow2.f32 %v1305_v1 }
 0x2aa   :  { %1750 = vpow2.f32 %v1307_v5 }
 0x2b0   :  { %v1745_v59 = vpop.eup %1744 }
 0x2b1   :  { %v1283_v61 = vmul.f32 1.0614054, %v1745_v59 }
 0x2b2   :  { %v1747_v62 = vpop.eup %1746 }
 0x2b3   :  { %v1285_v0 = vadd.f32 -1.4531521, %v1283_v61  ;;  %v1284_v2 = vmul.f32 1.0614054, %v1747_v62  ;;  %v1749_v17 = vpop.eup %1748 }
 0x2b4   :  { %v1751_v21 = vpop.eup %1750 }
 0x2b5   :  { %v1287_v3 = vmul.f32 %v1745_v59, %v1285_v0  ;;  %v1286_v4 = vadd.f32 -1.4531521, %v1284_v2 }
 0x2b7   :  { %v1289_v6 = vadd.f32 1.4214138, %v1287_v3  ;;  %v1288_v7 = vmul.f32 %v1747_v62, %v1286_v4 }
 0x2b9   :  { %v1291_v8 = vmul.f32 %v1745_v59, %v1289_v6  ;;  %v1290_v9 = vadd.f32 1.4214138, %v1288_v7 }
 0x2bb   :  { %v1293_v10 = vadd.f32 -0.28449672, %v1291_v8  ;;  %v1292_v11 = vmul.f32 %v1747_v62, %v1290_v9 }
 0x2bd   :  { %v1295_v12 = vmul.f32 %v1745_v59, %v1293_v10  ;;  %v1294_v13 = vadd.f32 -0.28449672, %v1292_v11 }
 0x2bf   :  { %v1297_v14 = vadd.f32 0.2548296, %v1295_v12  ;;  %v1296_v15 = vmul.f32 %v1747_v62, %v1294_v13 }
 0x2c1   :  { %v1299_v16 = vmul.f32 %v1745_v59, %v1297_v14  ;;  %v1298_v18 = vadd.f32 0.2548296, %v1296_v15 }
 0x2c3   :  { %v1309_v19 = vmul.f32 %v1749_v17, %v1299_v16  ;;  %v1300_v20 = vmul.f32 %v1747_v62, %v1298_v18 }
 0x2c5   :  { %v1311_v22 = vsub.f32 1.0, %v1309_v19  ;;  %v1310_v23 = vmul.f32 %v1751_v21, %v1300_v20 }
 0x2c7   :  { %v1315_v24 = vsub.f32 0.0, %v1311_v22  ;;  %v1312_v25 = vsub.f32 1.0, %v1310_v23 }
 0x2c9   :  { %v1317_v26 = vsel %vm1313_vm1, %v1311_v22, %v1315_v24  ;;  %v1316_v29 = vsub.f32 0.0, %v1312_v25 }
 0x2ca   :  { %v1319_v28 = vadd.f32 1.0, %v1317_v26 }
 0x2cb   :  { %v1318_v32 = vsel %vm1314_vm2, %v1312_v25, %v1316_v29 }
 0x2cc   :  { %v1321_v31 = vmul.f32 %v1319_v28, %v1269_v27  ;;  %v1320_v34 = vadd.f32 1.0, %v1318_v32 }
 0x2ce   :  { %v1330_v35 = vmul.f32 %v1446_v30, %v1321_v31  ;;  %v1322_v36 = vmul.f32 %v1320_v34, %v1270_v33 }
 0x2d0   :  { %1332 = vadd.xlane.f32.xlu0 %v1330_v35  ;;  %v1331_v37 = vmul.f32 %v1446_v30, %v1322_v36 }
 0x2d2   :  { %1334 = vadd.xlane.f32.xlu1 %v1331_v37 }
 0x35d   :  { %v1333_v38 = vpop.xlane.xlu0 %1332 }
 0x35e   :  { %1337 = vst.msk [vmem:[%s2247_s13] sm:$0xff] %vm1336_vm3, %v1333_v38 }
 0x35f   :  { %v1335_v39 = vpop.xlane.xlu1 %1334 }
 0x360   :  { %1338 = vst.msk [vmem:[%s2247_s13 + $0x8] sm:$0xff] %vm1336_vm3, %v1335_v39 }
 0x361   :  { %1343 = vsyncpa [#allocation4], 1 }
 0x362   :  { %1344 = vsyncpa [#allocation6], 1 }
 0x363   :  { %1345 = vsyncpa [#allocation9], 1 }
 0x364   :  { %1346 = vsyncpa [#allocation12], 1 }
 0x365   :  { %1347 = vsyncpa [#allocation15], 1 }

</bundles_post_ra>
